<compile_context>
chip_gen: v7x
topology: tpu7x:2x2x1
jax: 0.10.0
libtpu: 0.0.40
codegen_flags: <defaults>
</compile_context>

<pallas_src>
import jax
import jax.numpy as jnp
from jax.experimental import pallas as pl
from jax.experimental.pallas import tpu as pltpu


_SP_KERNEL = 7
_SP_PAD = (_SP_KERNEL - 1) // 2


# -------------------- Pallas kernels --------------------

def _channel_attention_kernel(x_ref, w1_ref, b1_ref, w2_ref, b2_ref,
                              xg_ref, cmax_ref, cmean_ref):
    """Fused channel attention for one batch element.

    x_ref:  (1, HW, C) input block
    MLP:    Linear(C, C//r) -> ReLU -> Linear(C//r, C), shared for avg & max pool
    Emits:  xg = x * sigmoid(mlp(avg)+mlp(max))   (channel-gated activations)
            cmax / cmean = max / mean over channels of xg (ChannelPool for spatial branch)
    """
    x = x_ref[0]                                       # (HW, C)
    avg = jnp.mean(x, axis=0, keepdims=True)           # global average pool -> (1, C)
    mx = jnp.max(x, axis=0, keepdims=True)             # global max pool     -> (1, C)

    def mlp(v):
        h = jnp.dot(v, w1_ref[...], preferred_element_type=jnp.float32) + b1_ref[...]
        h = jnp.maximum(h, 0.0)
        return jnp.dot(h, w2_ref[...], preferred_element_type=jnp.float32) + b2_ref[...]

    scale = jax.nn.sigmoid(mlp(avg) + mlp(mx))          # (1, C)
    xg = x * scale                                      # broadcast over HW (sublanes)
    xg_ref[0] = xg
    cmax_ref[0] = jnp.max(xg, axis=1, keepdims=True)    # (HW, 1)
    cmean_ref[0] = jnp.mean(xg, axis=1, keepdims=True)  # (HW, 1)


def _spatial_attention_kernel(xg_ref, p_ref, w_ref, o_ref):
    """Fused spatial attention for one batch element.

    p_ref: (1, HW, Kp) im2col patches of the 2-channel compress map (Kp lane-padded,
           includes a ones-column carrying the folded BatchNorm bias).
    w_ref: (Kp, 1) conv-weight column with the BatchNorm affine folded in.
    out  = xg * sigmoid(conv7x7(compress))
    """
    s = jax.nn.sigmoid(
        jnp.dot(p_ref[0], w_ref[...], preferred_element_type=jnp.float32))  # (HW, 1)
    o_ref[0] = xg_ref[0] * s


# -------------------- parameters --------------------

def init_params(key, channel_in, reduction_ratio=16):
    hidden = channel_in // reduction_ratio
    assert hidden >= 1, "channel_in must be >= reduction_ratio"
    k1, k2, k3, k4, k5 = jax.random.split(key, 5)

    def uni(k, shape, fan_in):
        b = 1.0 / (fan_in ** 0.5)
        return jax.random.uniform(k, shape, jnp.float32, -b, b)

    return {
        # shared MLP: Linear(C, C//r) -> ReLU -> Linear(C//r, C)  (PyTorch-style init)
        "w1": uni(k1, (channel_in, hidden), channel_in),
        "b1": uni(k2, (1, hidden), channel_in),
        "w2": uni(k3, (hidden, channel_in), hidden),
        "b2": uni(k4, (1, channel_in), hidden),
        # Spatial conv: Conv2d(2, 1, kernel=7, padding=3, bias=False), stored (Cin, kh, kw)
        "w_sp": uni(k5, (2, _SP_KERNEL, _SP_KERNEL), 2 * _SP_KERNEL * _SP_KERNEL),
        # BatchNorm2d(1): inference-mode running stats + affine
        "bn_gamma": jnp.ones((), jnp.float32),
        "bn_beta": jnp.zeros((), jnp.float32),
        "bn_mean": jnp.zeros((), jnp.float32),
        "bn_var": jnp.ones((), jnp.float32),
    }


# -------------------- forward --------------------

def cbam_forward(params, x_nchw):
    x = jnp.transpose(x_nchw, (0, 2, 3, 1)).astype(jnp.float32)   # NCHW -> NHWC
    n, h, w, c = x.shape
    hw = h * w
    cr = params["w1"].shape[1]
    x2 = x.reshape(n, hw, c)

    # ---- Kernel 1: channel attention + gating + ChannelPool (one pass over x) ----
    xg, cmax, cmean = pl.pallas_call(
        _channel_attention_kernel,
        grid=(n,),
        in_specs=[
            pl.BlockSpec((1, hw, c), lambda i: (i, 0, 0)),
            pl.BlockSpec((c, cr), lambda i: (0, 0)),
            pl.BlockSpec((1, cr), lambda i: (0, 0)),
            pl.BlockSpec((cr, c), lambda i: (0, 0)),
            pl.BlockSpec((1, c), lambda i: (0, 0)),
        ],
        out_specs=[
            pl.BlockSpec((1, hw, c), lambda i: (i, 0, 0)),
            pl.BlockSpec((1, hw, 1), lambda i: (i, 0, 0)),
            pl.BlockSpec((1, hw, 1), lambda i: (i, 0, 0)),
        ],
        out_shape=[
            jax.ShapeDtypeStruct((n, hw, c), jnp.float32),
            jax.ShapeDtypeStruct((n, hw, 1), jnp.float32),
            jax.ShapeDtypeStruct((n, hw, 1), jnp.float32),
        ],
        compiler_params=pltpu.CompilerParams(dimension_semantics=("parallel",)),
    )(x2, params["w1"], params["b1"], params["w2"], params["b2"])

    # ---- im2col for the 7x7 / 2-channel spatial conv (tiny N*H*W*2 map, wrapper glue) ----
    comp = jnp.concatenate([cmax, cmean], axis=-1).reshape(n, h, w, 2)
    comp = jnp.pad(comp, ((0, 0), (_SP_PAD, _SP_PAD), (_SP_PAD, _SP_PAD), (0, 0)))
    taps = [comp[:, i:i + h, j:j + w, :]
            for i in range(_SP_KERNEL) for j in range(_SP_KERNEL)]
    k_raw = 2 * _SP_KERNEL * _SP_KERNEL            # 98
    kp = 128                                       # lane-pad K: 98 taps + 1 bias col + zeros
    pat = jnp.concatenate(
        taps + [jnp.ones((n, h, w, 1), jnp.float32),
                jnp.zeros((n, h, w, kp - k_raw - 1), jnp.float32)],
        axis=-1).reshape(n, hw, kp)

    # Fold inference-mode BatchNorm2d(1) affine into the conv weight column.
    eps = 1e-5
    bn_scale = params["bn_gamma"] / jnp.sqrt(params["bn_var"] + eps)
    bn_bias = params["bn_beta"] - params["bn_mean"] * bn_scale
    w_flat = jnp.transpose(params["w_sp"], (1, 2, 0)).reshape(k_raw)   # (ki, kj, cin) order
    w_col = jnp.zeros((kp, 1), jnp.float32)
    w_col = w_col.at[:k_raw, 0].set(w_flat * bn_scale)
    w_col = w_col.at[k_raw, 0].set(bn_bias)        # bias row paired with the ones-column

    # ---- Kernel 2: spatial conv GEMM + sigmoid + final gating ----
    out = pl.pallas_call(
        _spatial_attention_kernel,
        grid=(n,),
        in_specs=[
            pl.BlockSpec((1, hw, c), lambda i: (i, 0, 0)),
            pl.BlockSpec((1, hw, kp), lambda i: (i, 0, 0)),
            pl.BlockSpec((kp, 1), lambda i: (0, 0)),
        ],
        out_specs=pl.BlockSpec((1, hw, c), lambda i: (i, 0, 0)),
        out_shape=jax.ShapeDtypeStruct((n, hw, c), jnp.float32),
        compiler_params=pltpu.CompilerParams(dimension_semantics=("parallel",)),
    )(xg, pat, w_col)

    return jnp.transpose(out.reshape(n, h, w, c), (0, 3, 1, 2))   # NHWC -> NCHW


# -------------------- pure-JAX reference (semantics check) --------------------

def cbam_reference(params, x_nchw):
    x = x_nchw.astype(jnp.float32)
    avg = jnp.mean(x, axis=(2, 3))
    mx = jnp.max(x, axis=(2, 3))

    def mlp(v):
        h = jnp.maximum(v @ params["w1"] + params["b1"], 0.0)
        return h @ params["w2"] + params["b2"]

    cscale = jax.nn.sigmoid(mlp(avg) + mlp(mx))
    xg = x * cscale[:, :, None, None]

    comp = jnp.concatenate([jnp.max(xg, axis=1, keepdims=True),
                            jnp.mean(xg, axis=1, keepdims=True)], axis=1)
    conv = jax.lax.conv_general_dilated(
        comp, params["w_sp"][None], (1, 1),
        [(_SP_PAD, _SP_PAD), (_SP_PAD, _SP_PAD)],
        dimension_numbers=("NCHW", "OIHW", "NCHW"),
        precision=jax.lax.Precision.HIGHEST)
    eps = 1e-5
    s = params["bn_gamma"] / jnp.sqrt(params["bn_var"] + eps)
    b = params["bn_beta"] - params["bn_mean"] * s
    return xg * jax.nn.sigmoid(conv * s + b)


if __name__ == "__main__":
    key = jax.random.PRNGKey(0)
    pkey, xkey = jax.random.split(key)
    # C must be >= reduction_ratio (16 -> hidden >= 1); C=128 keeps the lane axis dense.
    N, C, H, W = 2, 128, 16, 16
    params = init_params(pkey, channel_in=C, reduction_ratio=16)
    x = jax.random.normal(xkey, (N, C, H, W), jnp.float32)

    fwd = jax.jit(cbam_forward)
    out = jax.block_until_ready(fwd(params, x))
    assert out.shape == (N, C, H, W), out.shape
    assert bool(jnp.all(jnp.isfinite(out)))

    ref = cbam_reference(params, x)
    assert bool(jnp.allclose(out, ref, atol=2e-2, rtol=2e-2)), \
        float(jnp.max(jnp.abs(out - ref)))
    print("KERNEL_OK")
</pallas_src>

<mosaic_0001>
module attributes {stable_mosaic.version = 11 : i64} {
  func.func @_channel_attention_kernel(%arg0: i32, %arg1: memref<1x256x128xf32, #tpu.memory_space<vmem>>, %arg2: memref<128x8xf32, #tpu.memory_space<vmem>>, %arg3: memref<1x8xf32, #tpu.memory_space<vmem>>, %arg4: memref<8x128xf32, #tpu.memory_space<vmem>>, %arg5: memref<1x128xf32, #tpu.memory_space<vmem>>, %arg6: memref<1x256x128xf32, #tpu.memory_space<vmem>>, %arg7: memref<1x256x1xf32, #tpu.memory_space<vmem>>, %arg8: memref<1x256x1xf32, #tpu.memory_space<vmem>>) attributes {dimension_semantics = [#tpu.dimension_semantics<parallel>], iteration_bounds = array<i64: 2>, scalar_prefetch = 0 : i64, scratch_operands = 0 : i64, tpu.core_type = #tpu.core_type<tc>, window_params = [{transform_indices = @transform_0, window_bounds = array<i64: 1, 256, 128>}, {pipeline_mode = #tpu.pipeline_mode<synchronous>, transform_indices = @transform_1, window_bounds = array<i64: 128, 8>}, {pipeline_mode = #tpu.pipeline_mode<synchronous>, transform_indices = @transform_2, window_bounds = array<i64: 1, 8>}, {pipeline_mode = #tpu.pipeline_mode<synchronous>, transform_indices = @transform_3, window_bounds = array<i64: 8, 128>}, {pipeline_mode = #tpu.pipeline_mode<synchronous>, transform_indices = @transform_4, window_bounds = array<i64: 1, 128>}, {transform_indices = @transform_5, window_bounds = array<i64: 1, 256, 128>}, {transform_indices = @transform_6, window_bounds = array<i64: 1, 256, 1>}, {transform_indices = @transform_7, window_bounds = array<i64: 1, 256, 1>}]} {
    %c0 = arith.constant 0 : index
    %c0_0 = arith.constant 0 : index
    %c0_1 = arith.constant 0 : index
    %0 = vector.load %arg1[%c0, %c0_0, %c0_1] : memref<1x256x128xf32, #tpu.memory_space<vmem>>, vector<1x256x128xf32>
    %1 = vector.shape_cast %0 : vector<1x256x128xf32> to vector<256x128xf32>
    %cst = arith.constant dense<0.000000e+00> : vector<128xf32>
    %2 = vector.multi_reduction <add>, %1, %cst [0] : vector<256x128xf32> to vector<128xf32>
    %3 = vector.shape_cast %2 : vector<128xf32> to vector<1x128xf32>
    %cst_2 = arith.constant 2.560000e+02 : f32
    %4 = vector.broadcast %cst_2 : f32 to vector<1x128xf32>
    %5 = arith.divf %3, %4 : vector<1x128xf32>
    %cst_3 = arith.constant dense<0xFF800000> : vector<128xf32>
    %6 = vector.multi_reduction <maximumf>, %1, %cst_3 [0] : vector<256x128xf32> to vector<128xf32>
    %7 = vector.shape_cast %6 : vector<128xf32> to vector<1x128xf32>
    %c0_4 = arith.constant 0 : index
    %c0_5 = arith.constant 0 : index
    %8 = vector.load %arg2[%c0_4, %c0_5] : memref<128x8xf32, #tpu.memory_space<vmem>>, vector<128x8xf32>
    %cst_6 = arith.constant dense<0.000000e+00> : vector<1x8xf32>
    %9 = tpu.matmul %5, %8, %cst_6 {dimension_numbers = #tpu.dot_dimension_numbers<[1], [0], [0], [1], [0, 0, 1, 1], [], []>} : vector<1x128xf32>, vector<128x8xf32>, vector<1x8xf32> -> vector<1x8xf32>
    %c0_7 = arith.constant 0 : index
    %c0_8 = arith.constant 0 : index
    %10 = vector.load %arg3[%c0_7, %c0_8] : memref<1x8xf32, #tpu.memory_space<vmem>>, vector<1x8xf32>
    %11 = arith.addf %9, %10 : vector<1x8xf32>
    %cst_9 = arith.constant 0.000000e+00 : f32
    %12 = vector.broadcast %cst_9 : f32 to vector<1x8xf32>
    %13 = arith.maximumf %11, %12 : vector<1x8xf32>
    %c0_10 = arith.constant 0 : index
    %c0_11 = arith.constant 0 : index
    %14 = vector.load %arg4[%c0_10, %c0_11] : memref<8x128xf32, #tpu.memory_space<vmem>>, vector<8x128xf32>
    %cst_12 = arith.constant dense<0.000000e+00> : vector<1x128xf32>
    %15 = tpu.matmul %13, %14, %cst_12 {dimension_numbers = #tpu.dot_dimension_numbers<[1], [0], [0], [1], [0, 0, 1, 1], [], []>} : vector<1x8xf32>, vector<8x128xf32>, vector<1x128xf32> -> vector<1x128xf32>
    %c0_13 = arith.constant 0 : index
    %c0_14 = arith.constant 0 : index
    %16 = vector.load %arg5[%c0_13, %c0_14] : memref<1x128xf32, #tpu.memory_space<vmem>>, vector<1x128xf32>
    %17 = arith.addf %15, %16 : vector<1x128xf32>
    %c0_15 = arith.constant 0 : index
    %c0_16 = arith.constant 0 : index
    %18 = vector.load %arg2[%c0_15, %c0_16] : memref<128x8xf32, #tpu.memory_space<vmem>>, vector<128x8xf32>
    %cst_17 = arith.constant dense<0.000000e+00> : vector<1x8xf32>
    %19 = tpu.matmul %7, %18, %cst_17 {dimension_numbers = #tpu.dot_dimension_numbers<[1], [0], [0], [1], [0, 0, 1, 1], [], []>} : vector<1x128xf32>, vector<128x8xf32>, vector<1x8xf32> -> vector<1x8xf32>
    %c0_18 = arith.constant 0 : index
    %c0_19 = arith.constant 0 : index
    %20 = vector.load %arg3[%c0_18, %c0_19] : memref<1x8xf32, #tpu.memory_space<vmem>>, vector<1x8xf32>
    %21 = arith.addf %19, %20 : vector<1x8xf32>
    %cst_20 = arith.constant 0.000000e+00 : f32
    %22 = vector.broadcast %cst_20 : f32 to vector<1x8xf32>
    %23 = arith.maximumf %21, %22 : vector<1x8xf32>
    %c0_21 = arith.constant 0 : index
    %c0_22 = arith.constant 0 : index
    %24 = vector.load %arg4[%c0_21, %c0_22] : memref<8x128xf32, #tpu.memory_space<vmem>>, vector<8x128xf32>
    %cst_23 = arith.constant dense<0.000000e+00> : vector<1x128xf32>
    %25 = tpu.matmul %23, %24, %cst_23 {dimension_numbers = #tpu.dot_dimension_numbers<[1], [0], [0], [1], [0, 0, 1, 1], [], []>} : vector<1x8xf32>, vector<8x128xf32>, vector<1x128xf32> -> vector<1x128xf32>
    %c0_24 = arith.constant 0 : index
    %c0_25 = arith.constant 0 : index
    %26 = vector.load %arg5[%c0_24, %c0_25] : memref<1x128xf32, #tpu.memory_space<vmem>>, vector<1x128xf32>
    %27 = arith.addf %25, %26 : vector<1x128xf32>
    %28 = arith.addf %17, %27 : vector<1x128xf32>
    %29 = arith.negf %28 : vector<1x128xf32>
    %30 = math.exp %29 : vector<1x128xf32>
    %cst_26 = arith.constant 1.000000e+00 : f32
    %31 = vector.broadcast %cst_26 : f32 to vector<1x128xf32>
    %32 = arith.addf %31, %30 : vector<1x128xf32>
    %33 = arith.divf %31, %32 : vector<1x128xf32>
    %34 = vector.broadcast %33 : vector<1x128xf32> to vector<256x128xf32>
    %35 = arith.mulf %1, %34 : vector<256x128xf32>
    %c0_27 = arith.constant 0 : index
    %c0_28 = arith.constant 0 : index
    %c0_29 = arith.constant 0 : index
    %36 = vector.load %arg6[%c0_27, %c0_28, %c0_29] : memref<1x256x128xf32, #tpu.memory_space<vmem>>, vector<1x256x128xf32>
    %37 = vector.shape_cast %36 : vector<1x256x128xf32> to vector<256x128xf32>
    %38 = vector.shape_cast %35 : vector<256x128xf32> to vector<1x256x128xf32>
    tpu.vector_store %arg6[%c0_27, %c0_28, %c0_29], %38 {strides = array<i32>} : memref<1x256x128xf32, #tpu.memory_space<vmem>>, vector<1x256x128xf32>,
    %cst_30 = arith.constant dense<0xFF800000> : vector<256xf32>
    %39 = vector.multi_reduction <maximumf>, %35, %cst_30 [1] : vector<256x128xf32> to vector<256xf32>
    %40 = vector.shape_cast %39 : vector<256xf32> to vector<256x1xf32>
    %c0_31 = arith.constant 0 : index
    %c0_32 = arith.constant 0 : index
    %c0_33 = arith.constant 0 : index
    %41 = vector.load %arg7[%c0_31, %c0_32, %c0_33] : memref<1x256x1xf32, #tpu.memory_space<vmem>>, vector<1x256x1xf32>
    %42 = vector.shape_cast %41 : vector<1x256x1xf32> to vector<256x1xf32>
    %43 = vector.shape_cast %40 : vector<256x1xf32> to vector<1x256x1xf32>
    tpu.vector_store %arg7[%c0_31, %c0_32, %c0_33], %43 {strides = array<i32>} : memref<1x256x1xf32, #tpu.memory_space<vmem>>, vector<1x256x1xf32>,
    %cst_34 = arith.constant dense<0.000000e+00> : vector<256xf32>
    %44 = vector.multi_reduction <add>, %35, %cst_34 [1] : vector<256x128xf32> to vector<256xf32>
    %45 = vector.shape_cast %44 : vector<256xf32> to vector<256x1xf32>
    %cst_35 = arith.constant 1.280000e+02 : f32
    %46 = vector.broadcast %cst_35 : f32 to vector<256x1xf32>
    %47 = arith.divf %45, %46 : vector<256x1xf32>
    %c0_36 = arith.constant 0 : index
    %c0_37 = arith.constant 0 : index
    %c0_38 = arith.constant 0 : index
    %48 = vector.load %arg8[%c0_36, %c0_37, %c0_38] : memref<1x256x1xf32, #tpu.memory_space<vmem>>, vector<1x256x1xf32>
    %49 = vector.shape_cast %48 : vector<1x256x1xf32> to vector<256x1xf32>
    %50 = vector.shape_cast %47 : vector<256x1xf32> to vector<1x256x1xf32>
    tpu.vector_store %arg8[%c0_36, %c0_37, %c0_38], %50 {strides = array<i32>} : memref<1x256x1xf32, #tpu.memory_space<vmem>>, vector<1x256x1xf32>,
    return
  }
  func.func @transform_0(%arg0: i32) -> (i32, i32, i32) {
    %c0_i32 = arith.constant 0 : i32
    %c0_i32_0 = arith.constant 0 : i32
    %c0_i32_1 = arith.constant 0 : i32
    return %arg0, %c0_i32, %c0_i32_0 : i32, i32, i32
  }
  func.func @transform_1(%arg0: i32) -> (i32, i32) {
    %c0_i32 = arith.constant 0 : i32
    %c0_i32_0 = arith.constant 0 : i32
    %c0_i32_1 = arith.constant 0 : i32
    return %c0_i32, %c0_i32_0 : i32, i32
  }
  func.func @transform_2(%arg0: i32) -> (i32, i32) {
    %c0_i32 = arith.constant 0 : i32
    %c0_i32_0 = arith.constant 0 : i32
    %c0_i32_1 = arith.constant 0 : i32
    return %c0_i32, %c0_i32_0 : i32, i32
  }
  func.func @transform_3(%arg0: i32) -> (i32, i32) {
    %c0_i32 = arith.constant 0 : i32
    %c0_i32_0 = arith.constant 0 : i32
    %c0_i32_1 = arith.constant 0 : i32
    return %c0_i32, %c0_i32_0 : i32, i32
  }
  func.func @transform_4(%arg0: i32) -> (i32, i32) {
    %c0_i32 = arith.constant 0 : i32
    %c0_i32_0 = arith.constant 0 : i32
    %c0_i32_1 = arith.constant 0 : i32
    return %c0_i32, %c0_i32_0 : i32, i32
  }
  func.func @transform_5(%arg0: i32) -> (i32, i32, i32) {
    %c0_i32 = arith.constant 0 : i32
    %c0_i32_0 = arith.constant 0 : i32
    %c0_i32_1 = arith.constant 0 : i32
    return %arg0, %c0_i32, %c0_i32_0 : i32, i32, i32
  }
  func.func @transform_6(%arg0: i32) -> (i32, i32, i32) {
    %c0_i32 = arith.constant 0 : i32
    %c0_i32_0 = arith.constant 0 : i32
    %c0_i32_1 = arith.constant 0 : i32
    return %arg0, %c0_i32, %c0_i32_0 : i32, i32, i32
  }
  func.func @transform_7(%arg0: i32) -> (i32, i32, i32) {
    %c0_i32 = arith.constant 0 : i32
    %c0_i32_0 = arith.constant 0 : i32
    %c0_i32_1 = arith.constant 0 : i32
    return %arg0, %c0_i32, %c0_i32_0 : i32, i32, i32
  }
}

module attributes {stable_mosaic.version = 11 : i64} {
  func.func @_spatial_attention_kernel(%arg0: i32, %arg1: memref<1x256x128xf32, #tpu.memory_space<vmem>>, %arg2: memref<1x256x128xf32, #tpu.memory_space<vmem>>, %arg3: memref<128x1xf32, #tpu.memory_space<vmem>>, %arg4: memref<1x256x128xf32, #tpu.memory_space<vmem>>) attributes {dimension_semantics = [#tpu.dimension_semantics<parallel>], iteration_bounds = array<i64: 2>, scalar_prefetch = 0 : i64, scratch_operands = 0 : i64, tpu.core_type = #tpu.core_type<tc>, window_params = [{transform_indices = @transform_0, window_bounds = array<i64: 1, 256, 128>}, {transform_indices = @transform_1, window_bounds = array<i64: 1, 256, 128>}, {pipeline_mode = #tpu.pipeline_mode<synchronous>, transform_indices = @transform_2, window_bounds = array<i64: 128, 1>}, {transform_indices = @transform_3, window_bounds = array<i64: 1, 256, 128>}]} {
    %c0 = arith.constant 0 : index
    %c0_0 = arith.constant 0 : index
    %c0_1 = arith.constant 0 : index
    %0 = vector.load %arg2[%c0, %c0_0, %c0_1] : memref<1x256x128xf32, #tpu.memory_space<vmem>>, vector<1x256x128xf32>
    %1 = vector.shape_cast %0 : vector<1x256x128xf32> to vector<256x128xf32>
    %c0_2 = arith.constant 0 : index
    %c0_3 = arith.constant 0 : index
    %2 = vector.load %arg3[%c0_2, %c0_3] : memref<128x1xf32, #tpu.memory_space<vmem>>, vector<128x1xf32>
    %cst = arith.constant dense<0.000000e+00> : vector<256x1xf32>
    %3 = tpu.matmul %1, %2, %cst {dimension_numbers = #tpu.dot_dimension_numbers<[1], [0], [0], [1], [0, 0, 1, 1], [], []>} : vector<256x128xf32>, vector<128x1xf32>, vector<256x1xf32> -> vector<256x1xf32>
    %4 = arith.negf %3 : vector<256x1xf32>
    %5 = math.exp %4 : vector<256x1xf32>
    %cst_4 = arith.constant 1.000000e+00 : f32
    %6 = vector.broadcast %cst_4 : f32 to vector<256x1xf32>
    %7 = arith.addf %6, %5 : vector<256x1xf32>
    %8 = arith.divf %6, %7 : vector<256x1xf32>
    %c0_5 = arith.constant 0 : index
    %c0_6 = arith.constant 0 : index
    %c0_7 = arith.constant 0 : index
    %9 = vector.load %arg1[%c0_5, %c0_6, %c0_7] : memref<1x256x128xf32, #tpu.memory_space<vmem>>, vector<1x256x128xf32>
    %10 = vector.shape_cast %9 : vector<1x256x128xf32> to vector<256x128xf32>
    %11 = vector.broadcast %8 : vector<256x1xf32> to vector<256x128xf32>
    %12 = arith.mulf %10, %11 : vector<256x128xf32>
    %c0_8 = arith.constant 0 : index
    %c0_9 = arith.constant 0 : index
    %c0_10 = arith.constant 0 : index
    %13 = vector.load %arg4[%c0_8, %c0_9, %c0_10] : memref<1x256x128xf32, #tpu.memory_space<vmem>>, vector<1x256x128xf32>
    %14 = vector.shape_cast %13 : vector<1x256x128xf32> to vector<256x128xf32>
    %15 = vector.shape_cast %12 : vector<256x128xf32> to vector<1x256x128xf32>
    tpu.vector_store %arg4[%c0_8, %c0_9, %c0_10], %15 {strides = array<i32>} : memref<1x256x128xf32, #tpu.memory_space<vmem>>, vector<1x256x128xf32>,
    return
  }
  func.func @transform_0(%arg0: i32) -> (i32, i32, i32) {
    %c0_i32 = arith.constant 0 : i32
    %c0_i32_0 = arith.constant 0 : i32
    %c0_i32_1 = arith.constant 0 : i32
    return %arg0, %c0_i32, %c0_i32_0 : i32, i32, i32
  }
  func.func @transform_1(%arg0: i32) -> (i32, i32, i32) {
    %c0_i32 = arith.constant 0 : i32
    %c0_i32_0 = arith.constant 0 : i32
    %c0_i32_1 = arith.constant 0 : i32
    return %arg0, %c0_i32, %c0_i32_0 : i32, i32, i32
  }
  func.func @transform_2(%arg0: i32) -> (i32, i32) {
    %c0_i32 = arith.constant 0 : i32
    %c0_i32_0 = arith.constant 0 : i32
    %c0_i32_1 = arith.constant 0 : i32
    return %c0_i32, %c0_i32_0 : i32, i32
  }
  func.func @transform_3(%arg0: i32) -> (i32, i32, i32) {
    %c0_i32 = arith.constant 0 : i32
    %c0_i32_0 = arith.constant 0 : i32
    %c0_i32_1 = arith.constant 0 : i32
    return %arg0, %c0_i32, %c0_i32_0 : i32, i32, i32
  }
}

</mosaic_0001>

<bundles_post_ra>
// kernel: cbam_forward.2
= control target key start
LH: loop header
LB: loop body
LE: loop exit
PB: predicated region body
PF: predicated region fallthrough
CT: control target
= control target key end

     0   :  { %13 = vsyncpa [#allocation3], 0  ;;  %s2277_s0 = inlined_call_operand.hbm [shape: f32[2,256,128], index: 0, kind: input, shape index: {}]   ;;  %s2278_s1 = inlined_call_operand.vmem [shape: f32[128,8], index: 1, kind: input, shape index: {}]   ;;  %s2279_s2 = inlined_call_operand.vmem [shape: f32[1,8], index: 2, kind: input, shape index: {}]   ;;  %s2280_s3 = inlined_call_operand.vmem [shape: f32[8,128], index: 3, kind: input, shape index: {}]   ;;  %s2281_s4 = inlined_call_operand.vmem [shape: f32[1,128], index: 4, kind: input, shape index: {}]   ;;  %s2282_s5 = inlined_call_operand.vmem [shape: f32[2,256,128], index: 5, kind: output, shape index: {0}]   ;;  %s2283_s6 = inlined_call_operand.vmem [shape: f32[2,256,1], index: 6, kind: output, shape index: {1}]   ;;  %s2284_s7 = inlined_call_operand.vmem [shape: f32[2,256,1], index: 7, kind: output, shape index: {2}]  }
   0x1   :  { %15 = vsyncpa [#allocation3 + $0x1], 0  ;;  %s1526_s24 = smov 0   ;;  %s1528_s25 = smov 0  }
   0x2   :  { %s1530_s26 = smov 0   ;;  %s1532_s27 = smov 0  }
   0x3 LB: > { %s1545_s28 = sadd.s32 4294967295, %s1478_s27   ;;  %s1548_s29 = sadd.s32 1, %s1478_s27   ;;  %s1478_s27 = sphi %s1532_s27, %s2291_s27   ;;  %s1474_s26 = sphi %s1530_s26, %s2290_s26   ;;  %s1470_s25 = sphi %s1528_s25, %s2289_s25   ;;  %s1466_s24 = sphi %s1526_s24, %s2288_s24  }
   0x4   : > { %s25_s30 = ssub.s32 %s1478_s27, %s1548_s29  ;;  %s28_s8 = sadd.s32 1, %s1474_s26 }
   0x5   : > { %p26_p0 = scmp.eq.s32.totalorder %s25_s30, 0  ;;  %p35_p1 = scmp.ne.s32.totalorder %s1474_s26, %s1470_s25 }
   0x6   : > { %p36_p2 = scmp.eq.s32.totalorder %s1478_s27, 0  ;;  %p41_p3 = scmp.ne.s32.totalorder %s1470_s25, %s1466_s24 }
   0x7   : > { %s1558_s9 = scalar_select %p26_p0, %s1474_s26, %s28_s8  }
   0x8   : > { %p37_p4 = por %p36_p2, %p35_p1  ;;  %p42_p5 = scmp.eq.s32.totalorder %s1545_s28, 0 }
   0x9   : > { %p1372_p6 = scmp.lt.s32.totalorder %s1478_s27, 2  ;;  %s239_s11 = sand.u32 1, %s1474_s26  }
   0xa   : > { %p1562_p7 = por %p42_p5, %p41_p3  ;;  %s1177_s12 = sshll.u32 %s239_s11, 8 }
   0xb   : > { %s1193_s13 = sshll.u32 %s1478_s27, 12  ;;  %s243_s17 = scalar_lea.vmem [#allocation2], %s1177_s12 }
   0xc   : > { %s1571_s16 = scalar_lea.hbm %s2277_s0, %s1193_s13  ;;  %s250_s18 = sshll.u32 %s243_s17, 4  ;;  %s1573_s18 = int_to_ptr.vmem [resolvable:$true] %s250_s18 }
   0xd   : > { %p1575_p8 = pnand %p1372_p6, %p37_p4  ;;  %s1580_s20 = scalar_lea.sflag [#allocation3], %s239_s11 }
   0xe   : > { %s1414_s21 = scalar_lea.hbm %s1571_s16, 4096  ;;  %s1419_s24 = scalar_lea.hbm %s2277_s0, 8192 }
   0xf   : > { %p1415_p10 = scmp.ne.s32.totalorder %s1571_s16, %s1414_s21  ;;  %p1416_p11 = pneg %p1575_p8 }
  0x10   : > { %p1420_p0 = scmp.lt.u32.totalorder %s1571_s16, %s2277_s0  ;;  %p1421_p1 = scmp.lt.u32.totalorder %s1419_s24, %s1414_s21 }
  0x11   : > { %p1417_p12 = pnand %p1416_p11, %p1415_p10  ;;  %p1423_p3 = scmp.lt.u32.totalorder %s1414_s21, %s1571_s16 }
  0x12   : > { %p1422_p2 = por %p1421_p1, %p1420_p0 }
  0x13   : > { %p1418_p13 = pneg %p1417_p12 }
  0x14   : > { %p1424_p4 = por %p1423_p3, %p1422_p2 }
  0x16   : > { %p1425_p5 = pnand %p1424_p4, %p1418_p13 }
  0x18   : > { %1428 = shalt.err (!%p1425_p5)
}
  0x19   : > { %s1429_s11 = scalar_lea.vmem %s1573_s18, 4096  ;;  %s1480_s12 = smov [#allocation2]  }
  0x1a   : > { %p1430_p6 = scmp.ne.s32.totalorder %s1573_s18, %s1429_s11  ;;  %s1434_s13 = sshll.u32 %s1480_s12, 4  ;;  %s1435_s13 = int_to_ptr.vmem [resolvable:$false] %s1434_s13 }
  0x1b   : > { %s1436_s14 = scalar_lea.vmem %s1435_s13, 8192  ;;  %p1437_p9 = scmp.lt.s32.totalorder %s1573_s18, %s1435_s13 }
  0x1c   : > { %p1432_p10 = pnand %p1430_p6, %p1416_p11  ;;  %p1438_p0 = scmp.lt.s32.totalorder %s1436_s14, %s1429_s11 }
  0x1e   : > { %p1433_p12 = pneg %p1432_p10  ;;  %p1439_p1 = por %p1438_p0, %p1437_p9 }
  0x20   : > { %p1440_p2 = pnand %p1439_p1, %p1433_p12 }
  0x22   : > { %1443 = shalt.err (!%p1440_p2)
}
  0x23   : > { %s1481_s15 = smov 128   ;;  %s1482_s17 = smov 8  }
  0x24   : > { %1371 = dma.hbm_to_vmem [thread:$0]  (!%p1575_p8), %s1571_s16, 4096, %s1573_s18, %s1580_s20, %s1481_s15, %s1481_s15, %s1482_s17  }
  0x25   : > { %p258_p11 = scmp.lt.s32.totalorder %s1478_s27, 3  ;;  %p2287_p13 = scmp.ge.s32.totalorder %s1478_s27, 1 }
  0x27   : > { %p259_p3 = pnand %p2287_p13, %p258_p11 }
  0x28   : > { %s264_s21 = sand.u32 (!%p259_p3), 1, %s1470_s25  }
  0x29   : > { %262 = sbr.rel (%p259_p3) target bundleno = 859 (0x35b), region = 40  ;;  %s1181_s22 = sshll.u32 (!%p259_p3), %s264_s21, 8 }
  0x2a   : > { %s265_s23 = scalar_lea.sflag (!%p259_p3), [#allocation3], %s264_s21  ;;  %s1612_s24 = scalar_lea.vmem (!%p259_p3), [#allocation2], %s1181_s22 }
  0x30   : > { %1461 = dma.done.wait (%p1562_p7), %s265_s23, 4096  }
  0x31   : > { %1463 = vsyncadd (%p1562_p7), %s265_s23, 4294963200  ;;  %v1483_v0 = vmov 0.0|0.0   ;;  %vm1484_vm0 = vmmov 0   ;;  %v1485_v1 = vmov 0.0   ;;  %v432_v2 = vld [vmem:[%s2278_s1] sm:$0xff]  ;;  %v433_v3 = vld [vmem:[%s2278_s1 + $0x8] sm:$0xff] }
  0x32   : > { %1315 = vmatprep.subr.bf16.mxu0 %v1483_v0  ;;  %1339 = vmatprep.subr.bf16.mxu1 %v1483_v0  ;;  %v434_v4 = vld [vmem:[%s2278_s1 + $0x10] sm:$0xff]  ;;  %v1316_v5 = vpack.c.bf16 %v433_v3, %v432_v2  ;;  %v435_v6 = vld [vmem:[%s2278_s1 + $0x18] sm:$0xff]  ;;  %v436_v8 = vld [vmem:[%s2278_s1 + $0x20] sm:$0xff]  ;;  %vm522_vm1 = vcmask 64512   ;;  %p309_p7 = scmp.lt.s32.totalorder %s1545_s28, 1  ;;  %vm879_vm2 = vcmask 7168  }
  0x33   : > { %1267 = vmatprep.mubr.msk.f32.mxu0 %vm1484_vm0, %v1485_v1  ;;  %1307 = vmatprep.mubr.msk.f32.mxu1 %vm1484_vm0, %v1485_v1  ;;  %v1319_v7 = vpack.c.bf16 %v435_v6, %v434_v4  ;;  %v437_v9 = vld [vmem:[%s2278_s1 + $0x28] sm:$0xff]  ;;  %v1645_v10 = vld [vmem:[%s1612_s24] sm:$0xff]  ;;  %v438_v12 = vld [vmem:[%s2278_s1 + $0x30] sm:$0xff] }
  0x34   : > { %1317 = vmatpush3.bf16.msra.mxu0 %v1316_v5  ;;  %1341 = vmatpush3.bf16.msra.mxu1 %v1316_v5  ;;  %v1648_v11 = vld [vmem:[%s1612_s24 + $0x8] sm:$0xff]  ;;  %v1654_v13 = vld [vmem:[%s1612_s24 + $0x10] sm:$0xff]  ;;  %v1657_v14 = vld [vmem:[%s1612_s24 + $0x20] sm:$0xff]  ;;  %v1322_v16 = vpack.c.bf16 %v437_v9, %v436_v8  ;;  %s2293_s28 = smov (!%p309_p7, %s1545_s28), 1 }
  0x35   : > { %1318 = vmatprep.subr.bf16.mxu0 %v1483_v0  ;;  %1342 = vmatprep.subr.bf16.mxu1 %v1483_v0  ;;  %v356_v15 = vadd.f32 %v1648_v11, %v1645_v10  ;;  %v1662_v17 = vld [vmem:[%s1612_s24 + $0x18] sm:$0xff]  ;;  %v1665_v18 = vld [vmem:[%s1612_s24 + $0x28] sm:$0xff]  ;;  %v1668_v19 = vld [vmem:[%s1612_s24 + $0x30] sm:$0xff]  ;;  %v395_v20 = vmax.f32 %v1645_v10, %v1657_v14  ;;  %s1863_s18 = sshll.u32 %s2293_s28, 8 }
  0x36   : > { %v439_v21 = vld [vmem:[%s2278_s1 + $0x38] sm:$0xff]  ;;  %v1681_v23 = vld [vmem:[%s1612_s24 + $0x40] sm:$0xff]  ;;  %v396_v25 = vmax.f32 %v1648_v11, %v1665_v18  ;;  %v397_v26 = vmax.f32 %v1654_v13, %v1668_v19  ;;  %v1689_v27 = vld [vmem:[%s1612_s24 + $0x48] sm:$0xff]  ;;  %s1871_s30 = scalar_lea.vmem %s2282_s5, %s1863_s18  ;;  %s2128_s11 = scalar_lea.vmem %s2283_s6, %s1863_s18 }
  0x37   : > { %v1678_v22 = vld [vmem:[%s1612_s24 + $0x38] sm:$0xff]  ;;  %v357_v24 = vadd.f32 %v356_v15, %v1654_v13  ;;  %v1692_v28 = vld [vmem:[%s1612_s24 + $0x50] sm:$0xff]  ;;  %v399_v30 = vmax.f32 %v395_v20, %v1681_v23  ;;  %v1701_v32 = vld [vmem:[%s1612_s24 + $0x60] sm:$0xff]  ;;  %v1325_v36 = vpack.c.bf16 %v439_v21, %v438_v12 }
  0x38   : > { %1320 = vmatpush3.bf16.msra.mxu0 %v1319_v7  ;;  %1344 = vmatpush3.bf16.msra.mxu1 %v1319_v7  ;;  %v398_v29 = vmax.f32 %v1662_v17, %v1678_v22  ;;  %v1698_v31 = vld [vmem:[%s1612_s24 + $0x58] sm:$0xff]  ;;  %v400_v34 = vmax.f32 %v396_v25, %v1689_v27  ;;  %v401_v35 = vmax.f32 %v397_v26, %v1692_v28  ;;  %v440_v37 = vld [vmem:[%s2278_s1 + $0x40] sm:$0xff]  ;;  %v1710_v38 = vld [vmem:[%s1612_s24 + $0x68] sm:$0xff] }
  0x39   : > { %1321 = vmatprep.subr.bf16.mxu0 %v1483_v0  ;;  %1345 = vmatprep.subr.bf16.mxu1 %v1483_v0  ;;  %v358_v33 = vadd.f32 %v357_v24, %v1662_v17  ;;  %v1713_v39 = vld [vmem:[%s1612_s24 + $0x70] sm:$0xff]  ;;  %v403_v41 = vmax.f32 %v399_v30, %v1701_v32  ;;  %v441_v42 = vld [vmem:[%s2278_s1 + $0x48] sm:$0xff]  ;;  %v1723_v43 = vld [vmem:[%s1612_s24 + $0x78] sm:$0xff] }
  0x3a   : > { %v402_v40 = vmax.f32 %v398_v29, %v1698_v31  ;;  %v1726_v44 = vld [vmem:[%s1612_s24 + $0x80] sm:$0xff]  ;;  %v404_v46 = vmax.f32 %v400_v34, %v1710_v38  ;;  %v405_v47 = vmax.f32 %v401_v35, %v1713_v39  ;;  %v1732_v48 = vld [vmem:[%s1612_s24 + $0x88] sm:$0xff]  ;;  %v1735_v49 = vld [vmem:[%s1612_s24 + $0x90] sm:$0xff]  ;;  %v1328_v57 = vpack.c.bf16 %v441_v42, %v440_v37 }
  0x3b   : > { %v359_v45 = vadd.f32 %v358_v33, %v1657_v14  ;;  %v407_v51 = vmax.f32 %v403_v41, %v1726_v44  ;;  %v1740_v52 = vld [vmem:[%s1612_s24 + $0x98] sm:$0xff]  ;;  %v1743_v53 = vld [vmem:[%s1612_s24 + $0xa0] sm:$0xff]  ;;  %v442_v58 = vld [vmem:[%s2278_s1 + $0x50] sm:$0xff] }
  0x3c   : > { %1323 = vmatpush3.bf16.msra.mxu0 %v1322_v16  ;;  %1347 = vmatpush3.bf16.msra.mxu1 %v1322_v16  ;;  %v406_v50 = vmax.f32 %v402_v40, %v1723_v43  ;;  %v408_v55 = vmax.f32 %v404_v46, %v1732_v48  ;;  %v409_v56 = vmax.f32 %v405_v47, %v1735_v49  ;;  %v1752_v59 = vld [vmem:[%s1612_s24 + $0xa8] sm:$0xff]  ;;  %v1755_v60 = vld [vmem:[%s1612_s24 + $0xb0] sm:$0xff]  ;;  %v443_v63 = vld [vmem:[%s2278_s1 + $0x58] sm:$0xff] }
  0x3d   : > { %1324 = vmatprep.subr.bf16.mxu0 %v1483_v0  ;;  %1348 = vmatprep.subr.bf16.mxu1 %v1483_v0  ;;  %v360_v54 = vadd.f32 %v359_v45, %v1665_v18  ;;  %v411_v62 = vmax.f32 %v407_v51, %v1743_v53  ;;  %v1765_v2 = vld [vmem:[%s1612_s24 + $0xb8] sm:$0xff]  ;;  %v1768_v3 = vld [vmem:[%s1612_s24 + $0xc0] sm:$0xff]  ;;  %v1774_v7 = vld [vmem:[%s1612_s24 + $0xc8] sm:$0xff]  ;;  %v1331_v29 = vpack.c.bf16 %v443_v63, %v442_v58 }
  0x3e   : > { %v410_v61 = vmax.f32 %v406_v50, %v1740_v52  ;;  %v412_v5 = vmax.f32 %v408_v55, %v1752_v59  ;;  %v413_v6 = vmax.f32 %v409_v56, %v1755_v60  ;;  %v1777_v8 = vld [vmem:[%s1612_s24 + $0xd0] sm:$0xff]  ;;  %v1785_v16 = vld [vmem:[%s1612_s24 + $0xd8] sm:$0xff]  ;;  %v1788_v20 = vld [vmem:[%s1612_s24 + $0xe0] sm:$0xff] }
  0x3f   : > { %v361_v4 = vadd.f32 %v360_v54, %v1668_v19  ;;  %v1780_v9 = vld [vmem:[%s1612_s24 + $0xf0] sm:$0xff]  ;;  %v415_v15 = vmax.f32 %v411_v62, %v1768_v3  ;;  %v1791_v21 = vld [vmem:[%s1612_s24 + $0xf8] sm:$0xff]  ;;  %v1797_v30 = vld [vmem:[%s1612_s24 + $0xe8] sm:$0xff]  ;;  %s2186_s24 = scalar_lea.vmem %s2284_s7, %s1863_s18 }
  0x40   : > { %1326 = vmatpush3.bf16.msra.mxu0 %v1325_v36  ;;  %1350 = vmatpush3.bf16.msra.mxu1 %v1325_v36  ;;  %v414_v12 = vmax.f32 %v410_v61, %v1765_v2  ;;  %v416_v25 = vmax.f32 %v412_v5, %v1774_v7  ;;  %v417_v26 = vmax.f32 %v413_v6, %v1777_v8  ;;  %v444_v35 = vld [vmem:[%s2278_s1 + $0x60] sm:$0xff]  ;;  %v445_v36 = vld [vmem:[%s2278_s1 + $0x68] sm:$0xff]  ;;  %v446_v51 = vld [vmem:[%s2278_s1 + $0x70] sm:$0xff] }
  0x41   : > { %1327 = vmatprep.subr.bf16.mxu0 %v1483_v0  ;;  %1351 = vmatprep.subr.bf16.mxu1 %v1483_v0  ;;  %v362_v24 = vadd.f32 %v361_v4, %v1678_v22  ;;  %v419_v34 = vmax.f32 %v415_v15, %v1788_v20  ;;  %v1334_v47 = vpack.c.bf16 %v445_v36, %v444_v35  ;;  %v447_v54 = vld [vmem:[%s2278_s1 + $0x78] sm:$0xff] }
  0x42   : > { %v418_v33 = vmax.f32 %v414_v12, %v1785_v16  ;;  %v420_v40 = vmax.f32 %v416_v25, %v1797_v30  ;;  %v421_v41 = vmax.f32 %v417_v26, %v1780_v9  ;;  %v1337_v58 = vpack.c.bf16 %v447_v54, %v446_v51 }
  0x43   : > { %v363_v37 = vadd.f32 %v362_v24, %v1681_v23 }
  0x44   : > { %1329 = vmatpush3.bf16.msra.mxu0 %v1328_v57  ;;  %1353 = vmatpush3.bf16.msra.mxu1 %v1328_v57  ;;  %v422_v42 = vmax.f32 %v418_v33, %v1791_v21  ;;  %v423_v46 = vmax.f32 %v419_v34, %v420_v40 }
  0x45   : > { %1330 = vmatprep.subr.bf16.mxu0 %v1483_v0  ;;  %1354 = vmatprep.subr.bf16.mxu1 %v1483_v0  ;;  %v364_v45 = vadd.f32 %v363_v37, %v1689_v27 }
  0x46   : > { %v424_v50 = vmax.f32 %v421_v41, %v422_v42 }
  0x47   : > { %v365_v55 = vadd.f32 %v364_v45, %v1692_v28 }
  0x48   : > { %1332 = vmatpush3.bf16.msra.mxu0 %v1331_v29  ;;  %1356 = vmatpush3.bf16.msra.mxu1 %v1331_v29  ;;  %v425_v56 = vmax.f32 %v423_v46, %v424_v50 }
  0x49   : > { %1333 = vmatprep.subr.bf16.mxu0 %v1483_v0  ;;  %1357 = vmatprep.subr.bf16.mxu1 %v1483_v0  ;;  %v366_v57 = vadd.f32 %v365_v55, %v1698_v31 }
  0x4a   : > { %v426_v61 = vrot.slane %v425_v56, 4 }
  0x4b   : > { %v367_v62 = vadd.f32 %v366_v57, %v1701_v32 }
  0x4c   : > { %1335 = vmatpush3.bf16.msra.mxu0 %v1334_v47  ;;  %1359 = vmatpush3.bf16.msra.mxu1 %v1334_v47  ;;  %v427_v63 = vmax.f32 %v425_v56, %v426_v61 }
  0x4d   : > { %1336 = vmatprep.subr.bf16.mxu0 %v1483_v0  ;;  %1360 = vmatprep.subr.bf16.mxu1 %v1483_v0  ;;  %v368_v4 = vadd.f32 %v367_v62, %v1710_v38 }
  0x4e   : > { %v428_v5 = vrot.slane %v427_v63, 2 }
  0x4f   : > { %v369_v6 = vadd.f32 %v368_v4, %v1713_v39  ;;  %v448_v4 = vld [vmem:[%s2279_s2] sm:$0x1] }
  0x50   : > { %1338 = vmatpush3.bf16.msra.mxu0 %v1337_v58  ;;  %1362 = vmatpush3.bf16.msra.mxu1 %v1337_v58  ;;  %v429_v12 = vmax.f32 %v427_v63, %v428_v5  ;;  %v520_v63 = vld [vmem:[%s2280_s3] sm:$0xff] }
  0x51   : > { %1270 = vmatprep.subr.mxu0 %v1485_v1  ;;  %1310 = vmatprep.subr.mxu1 %v1485_v1  ;;  %v370_v15 = vadd.f32 %v369_v6, %v1723_v43 }
  0x52   : > { %v430_v24 = vrot.slane %v429_v12, 1 }
  0x53   : > { %v371_v0 = vadd.f32 %v370_v15, %v1726_v44 }
  0x54   : > { %v431_v25 = vmax.f32 %v429_v12, %v430_v24 }
  0x55   : > { %v372_v26 = vadd.f32 %v371_v0, %v1732_v48 }
  0x56   : > { %1308 = vmatmul.mubr.f32.vlgmr.msra.gmra.mrb[0].mxu1 %v431_v25 }
  0x57   : > { %v373_v29 = vadd.f32 %v372_v26, %v1735_v49  ;;  %1312 = vmatprep.mubr.msk.f32.mxu1 %vm1484_vm0, %v1485_v1  ;;  %1311 = vmatpush3.msra.mxu1 %v520_v63 }
  0x59   : > { %v374_v33 = vadd.f32 %v373_v29, %v1740_v52 }
  0x5b   : > { %v375_v34 = vadd.f32 %v374_v33, %v1743_v53  ;;  %v521_v33 = vld [vmem:[%s2281_s4] sm:$0x1] }
  0x5d   : > { %v376_v35 = vadd.f32 %v375_v34, %v1752_v59  ;;  %v1363_v34 = vadd.f32 %v521_v33, %v521_v33 }
  0x5f   : > { %v377_v36 = vadd.f32 %v376_v35, %v1755_v60 }
  0x61   : > { %v378_v37 = vadd.f32 %v377_v36, %v1765_v2 }
  0x63   : > { %v379_v40 = vadd.f32 %v378_v37, %v1768_v3 }
  0x65   : > { %v380_v41 = vadd.f32 %v379_v40, %v1774_v7 }
  0x67   : > { %v381_v42 = vadd.f32 %v380_v41, %v1777_v8 }
  0x69   : > { %v382_v45 = vadd.f32 %v381_v42, %v1785_v16 }
  0x6b   : > { %v383_v46 = vadd.f32 %v382_v45, %v1788_v20 }
  0x6d   : > { %v384_v47 = vadd.f32 %v383_v46, %v1797_v30  ;;  %v747_v46 = vlaneseq }
  0x6f   : > { %v385_v50 = vadd.f32 %v384_v47, %v1780_v9  ;;  %v748_v47 = vshrl.u32 %v747_v46, 7 }
  0x71   : > { %v386_v51 = vadd.f32 %v385_v50, %v1791_v21  ;;  %v749_v50 = vsub.s32 0, %v748_v47 }
  0x73   : > { %v387_v54 = vrot.slane %v386_v51, 4 }
  0x75   : > { %v388_v55 = vadd.f32 %v387_v54, %v386_v51 }
  0x77   : > { %v389_v56 = vrot.slane %v388_v55, 2 }
  0x79   : > { %v390_v57 = vadd.f32 %v389_v56, %v388_v55 }
  0x7b   : > { %v391_v58 = vrot.slane %v390_v57, 1 }
  0x7d   : > { %v392_v61 = vadd.f32 %v391_v58, %v390_v57 }
  0x7f   : > { %v394_v62 = vmul.f32 0.00390625, %v392_v61 }
  0x81   : > { %1268 = vmatmul.mubr.f32.vlgmr.msra.gmra.mrb[0].mxu0 %v394_v62 }
  0x82   : > { %1272 = vmatprep.mubr.msk.f32.mxu0 %vm1484_vm0, %v1485_v1  ;;  %1271 = vmatpush3.msra.mxu0 %v520_v63 }
 0x129   : > { %v662_v5 = vpop.f32.mrb[0].mxu1 }
 0x12a   : > { %v663_v6 = vadd.f32 %v662_v5, %v448_v4  ;;  %v1309_v12 = vpop.f32.mrb[1].mxu1 }
 0x12c   : > { %v666_v15 = vmax.f32 %v663_v6, 0.0 }
 0x12e   : > { %1313 = vmatmul.mubr.msk.f32.vlgmr.msra.gmra.mrb[2].mxu1 %vm522_vm1, %v666_v15 }
 0x154   : > { %v515_v24 = vpop.f32.mrb[0].mxu0 }
 0x155   : > { %v516_v0 = vadd.f32 %v515_v24, %v448_v4  ;;  %v1269_v25 = vpop.f32.mrb[1].mxu0 }
 0x157   : > { %v519_v1 = vmax.f32 %v516_v0, 0.0 }
 0x159   : > { %1273 = vmatmul.mubr.msk.f32.vlgmr.msra.gmra.mrb[2].mxu0 %vm522_vm1, %v519_v1 }
 0x201   : > { %v736_v26 = vpop.f32.mrb[2].mxu1 }
 0x202   : > { %v1314_v29 = vpop.f32.mrb[3].mxu1 }
 0x22c   : > { %v592_v35 = vpop.f32.mrb[2].mxu0 }
 0x22d   : > { %v1364_v36 = vadd.f32 %v1363_v34, %v592_v35  ;;  %v1274_v37 = vpop.f32.mrb[3].mxu0 }
 0x22f   : > { %v1365_v40 = vadd.f32 %v1364_v36, %v736_v26 }
 0x231   : > { %v1190_v41 = vmul.f32 -1.442695, %v1365_v40 }
 0x233   : > { %1410 = vpow2.f32 %v1190_v41 }
 0x23d   : > { %v1411_v42 = vpop.eup %1410 }
 0x23e   : > { %v744_v45 = vadd.f32 1.0, %v1411_v42 }
 0x240   : > { %1412 = vrcp.f32 %v744_v45 }
 0x24a   : > { %v1413_v51 = vpop.eup %1412 }
 0x24b   : > { %v1865_v54 = vrot.slane %v1413_v51, %v749_v50 }
 0x24d   : > { %v1875_v55 = vmul.f32 %v1865_v54, %v1654_v13  ;;  %v1879_v56 = vmul.f32 %v1865_v54, %v1645_v10  ;;  %v1883_v57 = vmul.f32 %v1865_v54, %v1662_v17  ;;  %v1887_v58 = vmul.f32 %v1865_v54, %v1648_v11 }
 0x24e   : > { %v1891_v61 = vmul.f32 %v1865_v54, %v1665_v18  ;;  %v1895_v10 = vmul.f32 %v1865_v54, %v1657_v14  ;;  %v1899_v13 = vmul.f32 %v1865_v54, %v1678_v22  ;;  %v1903_v17 = vmul.f32 %v1865_v54, %v1668_v19 }
 0x24f   : > { %819 = vmax.xlane.f32.xlu1 %v1875_v55  ;;  %785 = vst [vmem:[%s1871_s30 + $0x10] sm:$0xff] %v1875_v55  ;;  %815 = vmax.xlane.f32.xlu0 %v1879_v56  ;;  %783 = vst [vmem:[%s1871_s30] sm:$0xff] %v1879_v56  ;;  %v1917_v11 = vmul.f32 %v1865_v54, %v1689_v27  ;;  %v1921_v14 = vmul.f32 %v1865_v54, %v1681_v23 }
 0x250   : > { %786 = vst [vmem:[%s1871_s30 + $0x18] sm:$0xff] %v1883_v57  ;;  %784 = vst [vmem:[%s1871_s30 + $0x8] sm:$0xff] %v1887_v58  ;;  %v1925_v18 = vmul.f32 %v1865_v54, %v1698_v31  ;;  %v1937_v19 = vmul.f32 %v1865_v54, %v1692_v28  ;;  %v1941_v22 = vmul.f32 %v1865_v54, %v1710_v38 }
 0x251   : > { %788 = vst [vmem:[%s1871_s30 + $0x28] sm:$0xff] %v1891_v61  ;;  %787 = vst [vmem:[%s1871_s30 + $0x20] sm:$0xff] %v1895_v10  ;;  %v1945_v23 = vmul.f32 %v1865_v54, %v1701_v32  ;;  %v1949_v27 = vmul.f32 %v1865_v54, %v1723_v43  ;;  %v1959_v28 = vmul.f32 %v1865_v54, %v1713_v39 }
 0x252   : > { %790 = vst [vmem:[%s1871_s30 + $0x38] sm:$0xff] %v1899_v13  ;;  %789 = vst [vmem:[%s1871_s30 + $0x30] sm:$0xff] %v1903_v17  ;;  %v1963_v31 = vmul.f32 %v1865_v54, %v1732_v48  ;;  %v1967_v32 = vmul.f32 %v1865_v54, %v1726_v44  ;;  %v1971_v38 = vmul.f32 %v1865_v54, %v1740_v52 }
 0x253   : > { %792 = vst [vmem:[%s1871_s30 + $0x48] sm:$0xff] %v1917_v11  ;;  %791 = vst [vmem:[%s1871_s30 + $0x40] sm:$0xff] %v1921_v14  ;;  %v1983_v39 = vmul.f32 %v1865_v54, %v1735_v49  ;;  %v1987_v43 = vmul.f32 %v1865_v54, %v1752_v59  ;;  %v1991_v44 = vmul.f32 %v1865_v54, %v1743_v53  ;;  %821 = vmax.xlane.f32.xlu1 %v1883_v57 }
 0x254   : > { %794 = vst [vmem:[%s1871_s30 + $0x58] sm:$0xff] %v1925_v18  ;;  %793 = vst [vmem:[%s1871_s30 + $0x50] sm:$0xff] %v1937_v19  ;;  %v1995_v48 = vmul.f32 %v1865_v54, %v1765_v2  ;;  %817 = vmax.xlane.f32.xlu0 %v1887_v58  ;;  %v2009_v49 = vmul.f32 %v1865_v54, %v1755_v60  ;;  %v2013_v52 = vmul.f32 %v1865_v54, %v1774_v7 }
 0x255   : > { %796 = vst [vmem:[%s1871_s30 + $0x68] sm:$0xff] %v1941_v22  ;;  %795 = vst [vmem:[%s1871_s30 + $0x60] sm:$0xff] %v1945_v23  ;;  %v2017_v53 = vmul.f32 %v1865_v54, %v1768_v3  ;;  %v777_v59 = vmul.f32 %v1865_v54, %v1777_v8  ;;  %v2031_v60 = vmul.f32 %v1865_v54, %v1788_v20 }
 0x256   : > { %798 = vst [vmem:[%s1871_s30 + $0x78] sm:$0xff] %v1949_v27  ;;  %797 = vst [vmem:[%s1871_s30 + $0x70] sm:$0xff] %v1959_v28  ;;  %v2035_v2 = vmul.f32 %v1865_v54, %v1785_v16  ;;  %v2039_v3 = vmul.f32 %v1865_v54, %v1780_v9  ;;  %v2049_v7 = vmul.f32 %v1865_v54, %v1797_v30 }
 0x257   : > { %800 = vst [vmem:[%s1871_s30 + $0x88] sm:$0xff] %v1963_v31  ;;  %799 = vst [vmem:[%s1871_s30 + $0x80] sm:$0xff] %v1967_v32  ;;  %v2053_v8 = vmul.f32 %v1865_v54, %v1791_v21  ;;  %825 = vmax.xlane.f32.xlu1 %v1891_v61 }
 0x258   : > { %802 = vst [vmem:[%s1871_s30 + $0x98] sm:$0xff] %v1971_v38  ;;  %801 = vst [vmem:[%s1871_s30 + $0x90] sm:$0xff] %v1983_v39  ;;  %823 = vmax.xlane.f32.xlu0 %v1895_v10 }
 0x259   : > { %804 = vst [vmem:[%s1871_s30 + $0xa8] sm:$0xff] %v1987_v43  ;;  %803 = vst [vmem:[%s1871_s30 + $0xa0] sm:$0xff] %v1991_v44 }
 0x25a   : > { %806 = vst [vmem:[%s1871_s30 + $0xb8] sm:$0xff] %v1995_v48  ;;  %805 = vst [vmem:[%s1871_s30 + $0xb0] sm:$0xff] %v2009_v49 }
 0x25b   : > { %808 = vst [vmem:[%s1871_s30 + $0xc8] sm:$0xff] %v2013_v52  ;;  %807 = vst [vmem:[%s1871_s30 + $0xc0] sm:$0xff] %v2017_v53  ;;  %829 = vmax.xlane.f32.xlu1 %v1899_v13 }
 0x25c   : > { %809 = vst [vmem:[%s1871_s30 + $0xd0] sm:$0xff] %v777_v59  ;;  %811 = vst [vmem:[%s1871_s30 + $0xe0] sm:$0xff] %v2031_v60  ;;  %827 = vmax.xlane.f32.xlu0 %v1903_v17 }
 0x25d   : > { %810 = vst [vmem:[%s1871_s30 + $0xd8] sm:$0xff] %v2035_v2  ;;  %813 = vst [vmem:[%s1871_s30 + $0xf0] sm:$0xff] %v2039_v3 }
 0x25e   : > { %812 = vst [vmem:[%s1871_s30 + $0xe8] sm:$0xff] %v2049_v7  ;;  %814 = vst [vmem:[%s1871_s30 + $0xf8] sm:$0xff] %v2053_v8 }
 0x25f   : > { %833 = vmax.xlane.f32.xlu1 %v1917_v11 }
 0x260   : > { %831 = vmax.xlane.f32.xlu0 %v1921_v14 }
 0x263   : > { %837 = vmax.xlane.f32.xlu1 %v1925_v18 }
 0x264   : > { %835 = vmax.xlane.f32.xlu0 %v1937_v19 }
 0x267   : > { %841 = vmax.xlane.f32.xlu1 %v1941_v22 }
 0x268   : > { %839 = vmax.xlane.f32.xlu0 %v1945_v23 }
 0x26b   : > { %845 = vmax.xlane.f32.xlu1 %v1949_v27 }
 0x26c   : > { %843 = vmax.xlane.f32.xlu0 %v1959_v28 }
 0x26f   : > { %849 = vmax.xlane.f32.xlu1 %v1963_v31 }
 0x270   : > { %847 = vmax.xlane.f32.xlu0 %v1967_v32 }
 0x273   : > { %853 = vmax.xlane.f32.xlu1 %v1971_v38 }
 0x274   : > { %851 = vmax.xlane.f32.xlu0 %v1983_v39 }
 0x277   : > { %857 = vmax.xlane.f32.xlu1 %v1987_v43 }
 0x278   : > { %855 = vmax.xlane.f32.xlu0 %v1991_v44 }
 0x27b   : > { %861 = vmax.xlane.f32.xlu1 %v1995_v48 }
 0x27c   : > { %859 = vmax.xlane.f32.xlu0 %v2009_v49 }
 0x27f   : > { %865 = vmax.xlane.f32.xlu1 %v2013_v52 }
 0x280   : > { %863 = vmax.xlane.f32.xlu0 %v2017_v53 }
 0x283   : > { %912 = vadd.xlane.f32.xlu1 %v1879_v56 }
 0x284   : > { %867 = vmax.xlane.f32.xlu0 %v777_v59 }
 0x287   : > { %916 = vadd.xlane.f32.xlu1 %v1875_v55 }
 0x288   : > { %914 = vadd.xlane.f32.xlu0 %v1887_v58 }
 0x28b   : > { %920 = vadd.xlane.f32.xlu1 %v1895_v10 }
 0x28c   : > { %918 = vadd.xlane.f32.xlu0 %v1883_v57 }
 0x28f   : > { %924 = vadd.xlane.f32.xlu1 %v1903_v17 }
 0x290   : > { %922 = vadd.xlane.f32.xlu0 %v1891_v61 }
 0x293   : > { %928 = vadd.xlane.f32.xlu1 %v1921_v14 }
 0x294   : > { %926 = vadd.xlane.f32.xlu0 %v1899_v13 }
 0x297   : > { %932 = vadd.xlane.f32.xlu1 %v1937_v19 }
 0x298   : > { %930 = vadd.xlane.f32.xlu0 %v1917_v11 }
 0x29b   : > { %936 = vadd.xlane.f32.xlu1 %v1945_v23 }
 0x29c   : > { %934 = vadd.xlane.f32.xlu0 %v1925_v18 }
 0x29f   : > { %940 = vadd.xlane.f32.xlu1 %v1959_v28 }
 0x2a0   : > { %938 = vadd.xlane.f32.xlu0 %v1941_v22 }
 0x2a3   : > { %944 = vadd.xlane.f32.xlu1 %v1967_v32 }
 0x2a4   : > { %942 = vadd.xlane.f32.xlu0 %v1949_v27 }
 0x2a7   : > { %948 = vadd.xlane.f32.xlu1 %v1983_v39 }
 0x2a8   : > { %946 = vadd.xlane.f32.xlu0 %v1963_v31 }
 0x2ab   : > { %952 = vadd.xlane.f32.xlu1 %v1991_v44 }
 0x2ac   : > { %950 = vadd.xlane.f32.xlu0 %v1971_v38 }
 0x2af   : > { %956 = vadd.xlane.f32.xlu1 %v2009_v49 }
 0x2b0   : > { %954 = vadd.xlane.f32.xlu0 %v1987_v43 }
 0x2b3   : > { %960 = vadd.xlane.f32.xlu1 %v2017_v53 }
 0x2b4   : > { %958 = vadd.xlane.f32.xlu0 %v1995_v48 }
 0x2b7   : > { %964 = vadd.xlane.f32.xlu1 %v777_v59 }
 0x2b8   : > { %962 = vadd.xlane.f32.xlu0 %v2013_v52 }
 0x2bb   : > { %968 = vadd.xlane.f32.xlu1 %v2031_v60 }
 0x2bc   : > { %966 = vadd.xlane.f32.xlu0 %v2035_v2 }
 0x2bf   : > { %972 = vadd.xlane.f32.xlu1 %v2039_v3 }
 0x2c0   : > { %970 = vadd.xlane.f32.xlu0 %v2049_v7 }
 0x2c3   : > { %869 = vmax.xlane.f32.xlu1 %v2035_v2 }
 0x2c4   : > { %974 = vadd.xlane.f32.xlu0 %v2053_v8 }
 0x2c7   : > { %873 = vmax.xlane.f32.xlu1 %v2049_v7 }
 0x2c8   : > { %871 = vmax.xlane.f32.xlu0 %v2031_v60 }
 0x2cb   : > { %877 = vmax.xlane.f32.xlu1 %v2053_v8 }
 0x2cc   : > { %875 = vmax.xlane.f32.xlu0 %v2039_v3 }
 0x2dc   : > { %v820_v9 = vpop.xlane.xlu1 %819  ;;  %v816_v16 = vpop.xlane.xlu0 %815 }
 0x2dd   : > { %882 = vst.msk [vmem:[%s2128_s11 + $0x10] sm:$0xff] %vm879_vm2, %v820_v9  ;;  %880 = vst.msk [vmem:[%s2128_s11] sm:$0xff] %vm879_vm2, %v816_v16 }
 0x2e0   : > { %v822_v20 = vpop.xlane.xlu1 %821 }
 0x2e1   : > { %v818_v21 = vpop.xlane.xlu0 %817  ;;  %883 = vst.msk [vmem:[%s2128_s11 + $0x18] sm:$0xff] %vm879_vm2, %v822_v20 }
 0x2e2   : > { %881 = vst.msk [vmem:[%s2128_s11 + $0x8] sm:$0xff] %vm879_vm2, %v818_v21 }
 0x2e4   : > { %v826_v30 = vpop.xlane.xlu1 %825 }
 0x2e5   : > { %v824_v62 = vpop.xlane.xlu0 %823  ;;  %885 = vst.msk [vmem:[%s2128_s11 + $0x28] sm:$0xff] %vm879_vm2, %v826_v30 }
 0x2e6   : > { %884 = vst.msk [vmem:[%s2128_s11 + $0x20] sm:$0xff] %vm879_vm2, %v824_v62 }
 0x2e8   : > { %v830_v63 = vpop.xlane.xlu1 %829 }
 0x2e9   : > { %v828_v4 = vpop.xlane.xlu0 %827  ;;  %887 = vst.msk [vmem:[%s2128_s11 + $0x38] sm:$0xff] %vm879_vm2, %v830_v63 }
 0x2ea   : > { %886 = vst.msk [vmem:[%s2128_s11 + $0x30] sm:$0xff] %vm879_vm2, %v828_v4 }
 0x2ec   : > { %v834_v5 = vpop.xlane.xlu1 %833 }
 0x2ed   : > { %v832_v6 = vpop.xlane.xlu0 %831  ;;  %889 = vst.msk [vmem:[%s2128_s11 + $0x48] sm:$0xff] %vm879_vm2, %v834_v5 }
 0x2ee   : > { %888 = vst.msk [vmem:[%s2128_s11 + $0x40] sm:$0xff] %vm879_vm2, %v832_v6 }
 0x2f0   : > { %v838_v12 = vpop.xlane.xlu1 %837 }
 0x2f1   : > { %v836_v15 = vpop.xlane.xlu0 %835  ;;  %891 = vst.msk [vmem:[%s2128_s11 + $0x58] sm:$0xff] %vm879_vm2, %v838_v12 }
 0x2f2   : > { %890 = vst.msk [vmem:[%s2128_s11 + $0x50] sm:$0xff] %vm879_vm2, %v836_v15 }
 0x2f4   : > { %v842_v24 = vpop.xlane.xlu1 %841 }
 0x2f5   : > { %v840_v0 = vpop.xlane.xlu0 %839  ;;  %893 = vst.msk [vmem:[%s2128_s11 + $0x68] sm:$0xff] %vm879_vm2, %v842_v24 }
 0x2f6   : > { %892 = vst.msk [vmem:[%s2128_s11 + $0x60] sm:$0xff] %vm879_vm2, %v840_v0 }
 0x2f8   : > { %v846_v25 = vpop.xlane.xlu1 %845 }
 0x2f9   : > { %v844_v1 = vpop.xlane.xlu0 %843  ;;  %895 = vst.msk [vmem:[%s2128_s11 + $0x78] sm:$0xff] %vm879_vm2, %v846_v25 }
 0x2fa   : > { %894 = vst.msk [vmem:[%s2128_s11 + $0x70] sm:$0xff] %vm879_vm2, %v844_v1 }
 0x2fc   : > { %v850_v26 = vpop.xlane.xlu1 %849 }
 0x2fd   : > { %v848_v29 = vpop.xlane.xlu0 %847  ;;  %897 = vst.msk [vmem:[%s2128_s11 + $0x88] sm:$0xff] %vm879_vm2, %v850_v26 }
 0x2fe   : > { %896 = vst.msk [vmem:[%s2128_s11 + $0x80] sm:$0xff] %vm879_vm2, %v848_v29 }
 0x300   : > { %v854_v33 = vpop.xlane.xlu1 %853 }
 0x301   : > { %v852_v34 = vpop.xlane.xlu0 %851  ;;  %899 = vst.msk [vmem:[%s2128_s11 + $0x98] sm:$0xff] %vm879_vm2, %v854_v33 }
 0x302   : > { %898 = vst.msk [vmem:[%s2128_s11 + $0x90] sm:$0xff] %vm879_vm2, %v852_v34 }
 0x304   : > { %v858_v35 = vpop.xlane.xlu1 %857 }
 0x305   : > { %v856_v36 = vpop.xlane.xlu0 %855  ;;  %901 = vst.msk [vmem:[%s2128_s11 + $0xa8] sm:$0xff] %vm879_vm2, %v858_v35 }
 0x306   : > { %900 = vst.msk [vmem:[%s2128_s11 + $0xa0] sm:$0xff] %vm879_vm2, %v856_v36 }
 0x308   : > { %v862_v37 = vpop.xlane.xlu1 %861 }
 0x309   : > { %v860_v40 = vpop.xlane.xlu0 %859  ;;  %903 = vst.msk [vmem:[%s2128_s11 + $0xb8] sm:$0xff] %vm879_vm2, %v862_v37 }
 0x30a   : > { %902 = vst.msk [vmem:[%s2128_s11 + $0xb0] sm:$0xff] %vm879_vm2, %v860_v40 }
 0x30c   : > { %v866_v41 = vpop.xlane.xlu1 %865 }
 0x30d   : > { %v864_v42 = vpop.xlane.xlu0 %863  ;;  %905 = vst.msk [vmem:[%s2128_s11 + $0xc8] sm:$0xff] %vm879_vm2, %v866_v41 }
 0x30e   : > { %904 = vst.msk [vmem:[%s2128_s11 + $0xc0] sm:$0xff] %vm879_vm2, %v864_v42 }
 0x310   : > { %v913_v45 = vpop.xlane.xlu1 %912 }
 0x311   : > { %v868_v46 = vpop.xlane.xlu0 %867  ;;  %v977_v47 = vmul.f32 0.0078125, %v913_v45 }
 0x312   : > { %906 = vst.msk [vmem:[%s2128_s11 + $0xd0] sm:$0xff] %vm879_vm2, %v868_v46 }
 0x313   : > { %1009 = vst.msk [vmem:[%s2186_s24] sm:$0xff] %vm879_vm2, %v977_v47 }
 0x314   : > { %v917_v50 = vpop.xlane.xlu1 %916 }
 0x315   : > { %v915_v51 = vpop.xlane.xlu0 %914  ;;  %v979_v54 = vmul.f32 0.0078125, %v917_v50 }
 0x316   : > { %v978_v55 = vmul.f32 0.0078125, %v915_v51 }
 0x317   : > { %1011 = vst.msk [vmem:[%s2186_s24 + $0x10] sm:$0xff] %vm879_vm2, %v979_v54 }
 0x318   : > { %1010 = vst.msk [vmem:[%s2186_s24 + $0x8] sm:$0xff] %vm879_vm2, %v978_v55  ;;  %v921_v56 = vpop.xlane.xlu1 %920 }
 0x319   : > { %v919_v57 = vpop.xlane.xlu0 %918  ;;  %v981_v58 = vmul.f32 0.0078125, %v921_v56 }
 0x31a   : > { %v980_v61 = vmul.f32 0.0078125, %v919_v57 }
 0x31b   : > { %1013 = vst.msk [vmem:[%s2186_s24 + $0x20] sm:$0xff] %vm879_vm2, %v981_v58 }
 0x31c   : > { %1012 = vst.msk [vmem:[%s2186_s24 + $0x18] sm:$0xff] %vm879_vm2, %v980_v61  ;;  %v925_v10 = vpop.xlane.xlu1 %924 }
 0x31d   : > { %v923_v13 = vpop.xlane.xlu0 %922  ;;  %v983_v17 = vmul.f32 0.0078125, %v925_v10 }
 0x31e   : > { %v982_v11 = vmul.f32 0.0078125, %v923_v13 }
 0x31f   : > { %1015 = vst.msk [vmem:[%s2186_s24 + $0x30] sm:$0xff] %vm879_vm2, %v983_v17 }
 0x320   : > { %1014 = vst.msk [vmem:[%s2186_s24 + $0x28] sm:$0xff] %vm879_vm2, %v982_v11  ;;  %v929_v14 = vpop.xlane.xlu1 %928 }
 0x321   : > { %v927_v18 = vpop.xlane.xlu0 %926  ;;  %v985_v19 = vmul.f32 0.0078125, %v929_v14 }
 0x322   : > { %v984_v22 = vmul.f32 0.0078125, %v927_v18 }
 0x323   : > { %1017 = vst.msk [vmem:[%s2186_s24 + $0x40] sm:$0xff] %vm879_vm2, %v985_v19 }
 0x324   : > { %1016 = vst.msk [vmem:[%s2186_s24 + $0x38] sm:$0xff] %vm879_vm2, %v984_v22  ;;  %v933_v23 = vpop.xlane.xlu1 %932 }
 0x325   : > { %v931_v27 = vpop.xlane.xlu0 %930  ;;  %v987_v28 = vmul.f32 0.0078125, %v933_v23 }
 0x326   : > { %v986_v31 = vmul.f32 0.0078125, %v931_v27 }
 0x327   : > { %1019 = vst.msk [vmem:[%s2186_s24 + $0x50] sm:$0xff] %vm879_vm2, %v987_v28 }
 0x328   : > { %1018 = vst.msk [vmem:[%s2186_s24 + $0x48] sm:$0xff] %vm879_vm2, %v986_v31  ;;  %v937_v32 = vpop.xlane.xlu1 %936 }
 0x329   : > { %v935_v38 = vpop.xlane.xlu0 %934  ;;  %v989_v39 = vmul.f32 0.0078125, %v937_v32 }
 0x32a   : > { %v988_v43 = vmul.f32 0.0078125, %v935_v38 }
 0x32b   : > { %1021 = vst.msk [vmem:[%s2186_s24 + $0x60] sm:$0xff] %vm879_vm2, %v989_v39 }
 0x32c   : > { %1020 = vst.msk [vmem:[%s2186_s24 + $0x58] sm:$0xff] %vm879_vm2, %v988_v43  ;;  %v941_v44 = vpop.xlane.xlu1 %940 }
 0x32d   : > { %v939_v48 = vpop.xlane.xlu0 %938  ;;  %v991_v49 = vmul.f32 0.0078125, %v941_v44 }
 0x32e   : > { %v990_v52 = vmul.f32 0.0078125, %v939_v48 }
 0x32f   : > { %1023 = vst.msk [vmem:[%s2186_s24 + $0x70] sm:$0xff] %vm879_vm2, %v991_v49 }
 0x330   : > { %1022 = vst.msk [vmem:[%s2186_s24 + $0x68] sm:$0xff] %vm879_vm2, %v990_v52  ;;  %v945_v53 = vpop.xlane.xlu1 %944 }
 0x331   : > { %v943_v59 = vpop.xlane.xlu0 %942  ;;  %v993_v60 = vmul.f32 0.0078125, %v945_v53 }
 0x332   : > { %v992_v2 = vmul.f32 0.0078125, %v943_v59 }
 0x333   : > { %1025 = vst.msk [vmem:[%s2186_s24 + $0x80] sm:$0xff] %vm879_vm2, %v993_v60 }
 0x334   : > { %1024 = vst.msk [vmem:[%s2186_s24 + $0x78] sm:$0xff] %vm879_vm2, %v992_v2  ;;  %v949_v3 = vpop.xlane.xlu1 %948 }
 0x335   : > { %v947_v7 = vpop.xlane.xlu0 %946  ;;  %v995_v8 = vmul.f32 0.0078125, %v949_v3 }
 0x336   : > { %v994_v9 = vmul.f32 0.0078125, %v947_v7 }
 0x337   : > { %1027 = vst.msk [vmem:[%s2186_s24 + $0x90] sm:$0xff] %vm879_vm2, %v995_v8 }
 0x338   : > { %1026 = vst.msk [vmem:[%s2186_s24 + $0x88] sm:$0xff] %vm879_vm2, %v994_v9  ;;  %v953_v16 = vpop.xlane.xlu1 %952 }
 0x339   : > { %v951_v20 = vpop.xlane.xlu0 %950  ;;  %v997_v21 = vmul.f32 0.0078125, %v953_v16 }
 0x33a   : > { %v996_v30 = vmul.f32 0.0078125, %v951_v20 }
 0x33b   : > { %1029 = vst.msk [vmem:[%s2186_s24 + $0xa0] sm:$0xff] %vm879_vm2, %v997_v21 }
 0x33c   : > { %1028 = vst.msk [vmem:[%s2186_s24 + $0x98] sm:$0xff] %vm879_vm2, %v996_v30  ;;  %v957_v62 = vpop.xlane.xlu1 %956 }
 0x33d   : > { %v955_v63 = vpop.xlane.xlu0 %954  ;;  %v999_v4 = vmul.f32 0.0078125, %v957_v62 }
 0x33e   : > { %v998_v5 = vmul.f32 0.0078125, %v955_v63 }
 0x33f   : > { %1031 = vst.msk [vmem:[%s2186_s24 + $0xb0] sm:$0xff] %vm879_vm2, %v999_v4 }
 0x340   : > { %1030 = vst.msk [vmem:[%s2186_s24 + $0xa8] sm:$0xff] %vm879_vm2, %v998_v5  ;;  %v961_v6 = vpop.xlane.xlu1 %960 }
 0x341   : > { %v959_v12 = vpop.xlane.xlu0 %958  ;;  %v1001_v15 = vmul.f32 0.0078125, %v961_v6 }
 0x342   : > { %v1000_v24 = vmul.f32 0.0078125, %v959_v12 }
 0x343   : > { %1033 = vst.msk [vmem:[%s2186_s24 + $0xc0] sm:$0xff] %vm879_vm2, %v1001_v15 }
 0x344   : > { %1032 = vst.msk [vmem:[%s2186_s24 + $0xb8] sm:$0xff] %vm879_vm2, %v1000_v24  ;;  %v965_v0 = vpop.xlane.xlu1 %964 }
 0x345   : > { %v963_v25 = vpop.xlane.xlu0 %962  ;;  %v1003_v1 = vmul.f32 0.0078125, %v965_v0 }
 0x346   : > { %v1002_v26 = vmul.f32 0.0078125, %v963_v25 }
 0x347   : > { %1035 = vst.msk [vmem:[%s2186_s24 + $0xd0] sm:$0xff] %vm879_vm2, %v1003_v1 }
 0x348   : > { %1034 = vst.msk [vmem:[%s2186_s24 + $0xc8] sm:$0xff] %vm879_vm2, %v1002_v26  ;;  %v969_v29 = vpop.xlane.xlu1 %968 }
 0x349   : > { %v967_v33 = vpop.xlane.xlu0 %966  ;;  %v1005_v34 = vmul.f32 0.0078125, %v969_v29 }
 0x34a   : > { %v1004_v35 = vmul.f32 0.0078125, %v967_v33 }
 0x34b   : > { %1037 = vst.msk [vmem:[%s2186_s24 + $0xe0] sm:$0xff] %vm879_vm2, %v1005_v34 }
 0x34c   : > { %1036 = vst.msk [vmem:[%s2186_s24 + $0xd8] sm:$0xff] %vm879_vm2, %v1004_v35  ;;  %v973_v36 = vpop.xlane.xlu1 %972 }
 0x34d   : > { %v971_v37 = vpop.xlane.xlu0 %970  ;;  %v1007_v40 = vmul.f32 0.0078125, %v973_v36 }
 0x34e   : > { %v1006_v41 = vmul.f32 0.0078125, %v971_v37 }
 0x34f   : > { %1039 = vst.msk [vmem:[%s2186_s24 + $0xf0] sm:$0xff] %vm879_vm2, %v1007_v40 }
 0x350   : > { %1038 = vst.msk [vmem:[%s2186_s24 + $0xe8] sm:$0xff] %vm879_vm2, %v1006_v41  ;;  %v870_v42 = vpop.xlane.xlu1 %869 }
 0x351   : > { %v975_v45 = vpop.xlane.xlu0 %974  ;;  %907 = vst.msk [vmem:[%s2128_s11 + $0xd8] sm:$0xff] %vm879_vm2, %v870_v42 }
 0x352   : > { %v1008_v46 = vmul.f32 0.0078125, %v975_v45 }
 0x354   : > { %1040 = vst.msk [vmem:[%s2186_s24 + $0xf8] sm:$0xff] %vm879_vm2, %v1008_v46  ;;  %v874_v47 = vpop.xlane.xlu1 %873 }
 0x355   : > { %v872_v50 = vpop.xlane.xlu0 %871  ;;  %909 = vst.msk [vmem:[%s2128_s11 + $0xe8] sm:$0xff] %vm879_vm2, %v874_v47 }
 0x356   : > { %908 = vst.msk [vmem:[%s2128_s11 + $0xe0] sm:$0xff] %vm879_vm2, %v872_v50 }
 0x358   : > { %v878_v51 = vpop.xlane.xlu1 %877 }
 0x359   : > { %v876_v54 = vpop.xlane.xlu0 %875  ;;  %911 = vst.msk [vmem:[%s2128_s11 + $0xf8] sm:$0xff] %vm879_vm2, %v878_v51 }
 0x35a   : > { %910 = vst.msk [vmem:[%s2128_s11 + $0xf0] sm:$0xff] %vm879_vm2, %v876_v54 }
 0x35b PF: > { %p18_p8 = scmp.ge.s32.totalorder %s1548_s29, 4   ;;  %s2288_s24 = smov %s1470_s25 }
 0x35c   : > { %s2289_s25 = smov %s1474_s26  ;;  %s2290_s26 = smov %s1558_s9 }
 0x35d   : > { %s2291_s27 = smov %s1548_s29  ;;  %20 = sbr.rel (!%p18_p8) target bundleno = 3 (0x3), region = 104 }
 0x364   :  { %1094 = vsyncpa [#allocation3], 1 }
 0x365   :  { %1096 = vsyncpa [#allocation3 + $0x1], 1 }

// kernel: cbam_forward.3
= control target key start
LH: loop header
LB: loop body
LE: loop exit
PB: predicated region body
PF: predicated region fallthrough
CT: control target
= control target key end

     0   :  { %8 = vsyncpa [#allocation3], 0  ;;  %s1769_s0 = inlined_call_operand.vmem [shape: f32[2,256,128], index: 0, kind: input, shape index: {}]   ;;  %s1770_s1 = inlined_call_operand.vmem [shape: f32[2,256,128], index: 1, kind: input, shape index: {}]   ;;  %s1771_s2 = inlined_call_operand.vmem [shape: f32[128,1], index: 2, kind: input, shape index: {}]   ;;  %s1772_s3 = inlined_call_operand.hbm [shape: f32[2,256,128], index: 3, kind: output, shape index: {}]  }
   0x1   :  { %10 = vsyncpa [#allocation3 + $0x1], 0  ;;  %s1483_s12 = smov 0   ;;  %s1485_s13 = smov 0  }
   0x2   :  { %s1487_s14 = smov 0   ;;  %s1489_s15 = smov 0  }
   0x3 LB: > { %s1504_s16 = sadd.s32 4294967295, %s1457_s15   ;;  %s998_s17 = sadd.s32 4294967294, %s1457_s15   ;;  %s1457_s15 = sphi %s1489_s15, %s1778_s15   ;;  %s1453_s14 = sphi %s1487_s14, %s1777_s14   ;;  %s1449_s13 = sphi %s1485_s13, %s1776_s13   ;;  %s1445_s12 = sphi %s1483_s12, %s1775_s12  }
   0x4   : > { %s1508_s18 = sadd.s32 1, %s1457_s15   ;;  %s96_s19 = sadd.s32 1, %s1453_s14 }
   0x5   : > { %s93_s20 = ssub.s32 %s1457_s15, %s1508_s18  ;;  %p106_p0 = scmp.ne.s32.totalorder %s1453_s14, %s1449_s13 }
   0x6   : > { %p94_p1 = scmp.eq.s32.totalorder %s93_s20, 0  ;;  %p107_p2 = scmp.eq.s32.totalorder %s1504_s16, 1 }
   0x7   : > { %p112_p3 = scmp.ne.s32.totalorder %s1449_s13, %s1445_s12  ;;  %p113_p4 = scmp.eq.s32.totalorder %s998_s17, 1 }
   0x8   : > { %s1519_s21 = scalar_select %p94_p1, %s1453_s14, %s96_s19  }
   0x9   : > { %p1521_p5 = por %p107_p2, %p106_p0  ;;  %p1525_p6 = por %p113_p4, %p112_p3 }
   0xa   : > { %p1001_p7 = scmp.ge.s32.totalorder %s1457_s15, 1  ;;  %p150_p8 = scmp.lt.s32.totalorder %s1457_s15, 3 }
   0xc   : > { %p151_p9 = pnand %p1001_p7, %p150_p8 }
   0xd   : > { %v221_v0 = vld [vmem:[%s1771_s2] sm:$0xff] (!%p151_p9)  ;;  %v222_v1 = vld [vmem:[%s1771_s2 + $0x8] sm:$0xff] (!%p151_p9)  ;;  %v223_v2 = vld [vmem:[%s1771_s2 + $0x10] sm:$0xff] (!%p151_p9)  ;;  %p179_p10 = scmp.lt.s32.totalorder (!%p151_p9), %s1504_s16, 1  ;;  %v1459_v56 = vmov (!%p151_p9), 0   ;;  %s1460_s17 = smov (!%p151_p9), [#allocation2]  }
   0xe   : > { %154 = sbr.rel (%p151_p9) target bundleno = 494 (0x1ee), region = 32  ;;  %v1175_v3 = vpack.c.bf16 (!%p151_p9), %v222_v1, %v221_v0  ;;  %v224_v4 = vld [vmem:[%s1771_s2 + $0x18] sm:$0xff] (!%p151_p9)  ;;  %v225_v6 = vld [vmem:[%s1771_s2 + $0x20] sm:$0xff] (!%p151_p9)  ;;  %v226_v7 = vld [vmem:[%s1771_s2 + $0x28] sm:$0xff] (!%p151_p9)  ;;  %1266 = vset.pattern.permute.xlu1 (!%p151_p9), %v1459_v56  ;;  %1265 = vset.pattern.permute.xlu0 (!%p151_p9), %v1459_v56  ;;  %s1399_s19 = sshll.u32 (!%p151_p9), %s1460_s17, 4  ;;  %s1400_s19 = int_to_ptr.vmem [resolvable:$false] %s1399_s19 }
   0xf   : > { %v1179_v5 = vpack.c.bf16 (!%p151_p9), %v224_v4, %v223_v2  ;;  %v1183_v8 = vpack.c.bf16 (!%p151_p9), %v226_v7, %v225_v6  ;;  %v227_v9 = vld [vmem:[%s1771_s2 + $0x30] sm:$0xff] (!%p151_p9)  ;;  %v228_v10 = vld [vmem:[%s1771_s2 + $0x38] sm:$0xff] (!%p151_p9)  ;;  %v229_v14 = vld [vmem:[%s1771_s2 + $0x40] sm:$0xff] (!%p151_p9)  ;;  %s1401_s20 = scalar_lea.vmem (!%p151_p9), %s1400_s19, 8192 }
  0x10   : > { %1176 = vmatprep.subr.bf16.mxu0 (!%p151_p9), %v1175_v3  ;;  %1207 = vmatprep.subr.bf16.mxu1 (!%p151_p9), %v1175_v3  ;;  %v1187_v13 = vpack.c.bf16 (!%p151_p9), %v228_v10, %v227_v9  ;;  %v230_v15 = vld [vmem:[%s1771_s2 + $0x48] sm:$0xff] (!%p151_p9)  ;;  %v231_v17 = vld [vmem:[%s1771_s2 + $0x50] sm:$0xff] (!%p151_p9)  ;;  %v232_v18 = vld [vmem:[%s1771_s2 + $0x58] sm:$0xff] (!%p151_p9) }
  0x11   : > { %1178 = vmatpush3.bf16.msra.mxu0 (!%p151_p9), %v1175_v3  ;;  %1215 = vmatpush3.bf16.msra.mxu1 (!%p151_p9), %v1175_v3  ;;  %v1191_v16 = vpack.c.bf16 (!%p151_p9), %v230_v15, %v229_v14  ;;  %v1195_v19 = vpack.c.bf16 (!%p151_p9), %v232_v18, %v231_v17  ;;  %v233_v20 = vld [vmem:[%s1771_s2 + $0x60] sm:$0xff] (!%p151_p9)  ;;  %v234_v21 = vld [vmem:[%s1771_s2 + $0x68] sm:$0xff] (!%p151_p9)  ;;  %v235_v23 = vld [vmem:[%s1771_s2 + $0x70] sm:$0xff] (!%p151_p9) }
  0x12   : > { %1180 = vmatprep.subr.bf16.mxu0 (!%p151_p9), %v1179_v5  ;;  %1208 = vmatprep.subr.bf16.mxu1 (!%p151_p9), %v1179_v5  ;;  %v1199_v22 = vpack.c.bf16 (!%p151_p9), %v234_v21, %v233_v20  ;;  %v236_v24 = vld [vmem:[%s1771_s2 + $0x78] sm:$0xff] (!%p151_p9) }
  0x13   : > { %v1203_v25 = vpack.c.bf16 (!%p151_p9), %v236_v24, %v235_v23 }
  0x15   : > { %s1551_s9 = scalar_select %p179_p10, %s1504_s16, 1  ;;  %1182 = vmatpush3.bf16.msra.mxu0 %v1179_v5  ;;  %1216 = vmatpush3.bf16.msra.mxu1 %v1179_v5 }
  0x16   : > { %1184 = vmatprep.subr.bf16.mxu0 %v1183_v8  ;;  %1209 = vmatprep.subr.bf16.mxu1 %v1183_v8 }
  0x17   : > { %s1044_s10 = sshll.u32 %s1551_s9, 8 }
  0x18   : > { %s1562_s24 = scalar_lea.vmem %s1770_s1, %s1044_s10  ;;  %s1647_s30 = scalar_lea.vmem %s1769_s0, %s1044_s10 }
  0x19   : > { %v189_v11 = vld [vmem:[%s1562_s24] sm:$0xff]  ;;  %1186 = vmatpush3.bf16.msra.mxu0 %v1183_v8  ;;  %1217 = vmatpush3.bf16.msra.mxu1 %v1183_v8  ;;  %v190_v26 = vld [vmem:[%s1562_s24 + $0x8] sm:$0xff]  ;;  %v191_v28 = vld [vmem:[%s1562_s24 + $0x10] sm:$0xff]  ;;  %s1046_s10 = sshll.u32 %s1504_s16, 12 }
  0x1a   : > { %v205_v12 = vld [vmem:[%s1562_s24 + $0x80] sm:$0xff]  ;;  %1127 = vmatprep.mubr.f32.mxu0 %v189_v11  ;;  %1188 = vmatprep.subr.bf16.mxu0 %v1187_v13  ;;  %v206_v27 = vld [vmem:[%s1562_s24 + $0x88] sm:$0xff]  ;;  %v207_v29 = vld [vmem:[%s1562_s24 + $0x90] sm:$0xff]  ;;  %s1720_s8 = scalar_lea.hbm %s1772_s3, %s1046_s10 }
  0x1b   : > { %1151 = vmatprep.mubr.f32.mxu1 %v205_v12  ;;  %1210 = vmatprep.subr.bf16.mxu1 %v1187_v13  ;;  %v192_v30 = vld [vmem:[%s1562_s24 + $0x18] sm:$0xff]  ;;  %v193_v32 = vld [vmem:[%s1562_s24 + $0x20] sm:$0xff]  ;;  %v194_v34 = vld [vmem:[%s1562_s24 + $0x28] sm:$0xff] }
  0x1c   : > { %v208_v31 = vld [vmem:[%s1562_s24 + $0x98] sm:$0xff]  ;;  %v209_v33 = vld [vmem:[%s1562_s24 + $0xa0] sm:$0xff]  ;;  %v210_v35 = vld [vmem:[%s1562_s24 + $0xa8] sm:$0xff] }
  0x1d   : > { %1190 = vmatpush3.bf16.msra.mxu0 %v1187_v13  ;;  %1218 = vmatpush3.bf16.msra.mxu1 %v1187_v13  ;;  %v195_v36 = vld [vmem:[%s1562_s24 + $0x30] sm:$0xff]  ;;  %v196_v38 = vld [vmem:[%s1562_s24 + $0x38] sm:$0xff]  ;;  %v197_v40 = vld [vmem:[%s1562_s24 + $0x40] sm:$0xff] }
  0x1e   : > { %1192 = vmatprep.subr.bf16.mxu0 %v1191_v16  ;;  %1211 = vmatprep.subr.bf16.mxu1 %v1191_v16  ;;  %v211_v37 = vld [vmem:[%s1562_s24 + $0xb0] sm:$0xff]  ;;  %v212_v39 = vld [vmem:[%s1562_s24 + $0xb8] sm:$0xff]  ;;  %v213_v41 = vld [vmem:[%s1562_s24 + $0xc0] sm:$0xff] }
  0x1f   : > { %v198_v42 = vld [vmem:[%s1562_s24 + $0x48] sm:$0xff]  ;;  %v199_v44 = vld [vmem:[%s1562_s24 + $0x50] sm:$0xff]  ;;  %v200_v46 = vld [vmem:[%s1562_s24 + $0x58] sm:$0xff] }
  0x20   : > { %v214_v43 = vld [vmem:[%s1562_s24 + $0xc8] sm:$0xff]  ;;  %v215_v45 = vld [vmem:[%s1562_s24 + $0xd0] sm:$0xff]  ;;  %v216_v47 = vld [vmem:[%s1562_s24 + $0xd8] sm:$0xff] }
  0x21   : > { %1194 = vmatpush3.bf16.msra.mxu0 %v1191_v16  ;;  %1219 = vmatpush3.bf16.msra.mxu1 %v1191_v16  ;;  %v201_v48 = vld [vmem:[%s1562_s24 + $0x60] sm:$0xff]  ;;  %v202_v50 = vld [vmem:[%s1562_s24 + $0x68] sm:$0xff]  ;;  %v203_v52 = vld [vmem:[%s1562_s24 + $0x70] sm:$0xff] }
  0x22   : > { %1196 = vmatprep.subr.bf16.mxu0 %v1195_v19  ;;  %1212 = vmatprep.subr.bf16.mxu1 %v1195_v19  ;;  %v217_v49 = vld [vmem:[%s1562_s24 + $0xe0] sm:$0xff]  ;;  %v218_v51 = vld [vmem:[%s1562_s24 + $0xe8] sm:$0xff]  ;;  %v219_v53 = vld [vmem:[%s1562_s24 + $0xf0] sm:$0xff] }
  0x23   : > { %v204_v54 = vld [vmem:[%s1562_s24 + $0x78] sm:$0xff] }
  0x24   : > { %v220_v55 = vld [vmem:[%s1562_s24 + $0xf8] sm:$0xff]  ;;  %s176_s24 = sand.u32 1, %s1449_s13  }
  0x25   : > { %1198 = vmatpush3.bf16.msra.mxu0 %v1195_v19  ;;  %1220 = vmatpush3.bf16.msra.mxu1 %v1195_v19  ;;  %s1002_s4 = sshll.u32 %s176_s24, 8  ;;  %s1728_s16 = scalar_lea.sflag [#allocation3], %s176_s24 }
  0x26   : > { %1200 = vmatprep.subr.bf16.mxu0 %v1199_v22  ;;  %1213 = vmatprep.subr.bf16.mxu1 %v1199_v22  ;;  %s1654_s9 = scalar_lea.vmem [#allocation2], %s1002_s4 }
  0x27   : > { %s924_s5 = sshll.u32 %s1654_s9, 4  ;;  %s1722_s5 = int_to_ptr.vmem [resolvable:$true] %s924_s5 }
  0x28   : > { %s1395_s11 = scalar_lea.vmem %s1722_s5, 4096  ;;  %p1402_p0 = scmp.lt.s32.totalorder %s1722_s5, %s1400_s19 }
  0x29   : > { %1202 = vmatpush3.bf16.msra.mxu0 %v1199_v22  ;;  %1221 = vmatpush3.bf16.msra.mxu1 %v1199_v22  ;;  %p1396_p11 = scmp.ne.s32.totalorder %s1722_s5, %s1395_s11  ;;  %p1403_p1 = scmp.lt.s32.totalorder %s1401_s20, %s1395_s11 }
  0x2a   : > { %1204 = vmatprep.subr.bf16.mxu0 %v1203_v25  ;;  %1214 = vmatprep.subr.bf16.mxu1 %v1203_v25 }
  0x2b   : > { %p1397_p12 = pnand %p1396_p11, %p1521_p5  ;;  %p1404_p2 = por %p1403_p1, %p1402_p0 }
  0x2d   : > { %1206 = vmatpush3.bf16.msra.mxu0 %v1203_v25  ;;  %1222 = vmatpush3.bf16.msra.mxu1 %v1203_v25  ;;  %p1398_p13 = pneg %p1397_p12 }
  0x2f   : > { %p1405_p3 = pnand %p1404_p2, %p1398_p13 }
  0x30   : > { %1128 = vmatmul.mubr.f32.vlgmr.msra.gmra.mrb[0].mxu0 %v190_v26  ;;  %1152 = vmatmul.mubr.f32.vlgmr.msra.gmra.mrb[0].mxu1 %v206_v27 }
  0x31   : > { %1130 = vmatprep.mubr.f32.mxu0 %v191_v28  ;;  %1154 = vmatprep.mubr.f32.mxu1 %v207_v29 }
  0x34   : > { %1131 = vmatmul.mubr.f32.gmra.mrb[2].mxu0 %v192_v30  ;;  %1155 = vmatmul.mubr.f32.gmra.mrb[2].mxu1 %v208_v31 }
  0x35   : > { %1133 = vmatprep.mubr.f32.mxu0 %v193_v32  ;;  %1157 = vmatprep.mubr.f32.mxu1 %v209_v33 }
  0x38   : > { %1134 = vmatmul.mubr.f32.gmra.mrb[4].mxu0 %v194_v34  ;;  %1158 = vmatmul.mubr.f32.gmra.mrb[4].mxu1 %v210_v35 }
  0x39   : > { %1136 = vmatprep.mubr.f32.mxu0 %v195_v36  ;;  %1160 = vmatprep.mubr.f32.mxu1 %v211_v37 }
  0x3c   : > { %1137 = vmatmul.mubr.f32.gmra.mrb[6].mxu0 %v196_v38  ;;  %1161 = vmatmul.mubr.f32.gmra.mrb[6].mxu1 %v212_v39 }
  0x3d   : > { %1139 = vmatprep.mubr.f32.mxu0 %v197_v40  ;;  %1163 = vmatprep.mubr.f32.mxu1 %v213_v41 }
  0x40   : > { %1140 = vmatmul.mubr.f32.gmra.mrb[8].mxu0 %v198_v42  ;;  %1164 = vmatmul.mubr.f32.gmra.mrb[8].mxu1 %v214_v43 }
  0x41   : > { %1142 = vmatprep.mubr.f32.mxu0 %v199_v44  ;;  %1166 = vmatprep.mubr.f32.mxu1 %v215_v45 }
  0x44   : > { %1143 = vmatmul.mubr.f32.gmra.mrb[10].mxu0 %v200_v46  ;;  %1167 = vmatmul.mubr.f32.gmra.mrb[10].mxu1 %v216_v47 }
  0x45   : > { %1145 = vmatprep.mubr.f32.mxu0 %v201_v48  ;;  %1169 = vmatprep.mubr.f32.mxu1 %v217_v49 }
  0x48   : > { %1146 = vmatmul.mubr.f32.gmra.mrb[12].mxu0 %v202_v50  ;;  %1170 = vmatmul.mubr.f32.gmra.mrb[12].mxu1 %v218_v51 }
  0x49   : > { %1148 = vmatprep.mubr.f32.mxu0 %v203_v52  ;;  %1172 = vmatprep.mubr.f32.mxu1 %v219_v53 }
  0x4c   : > { %1149 = vmatmul.mubr.f32.gmra.mrb[14].mxu0 %v204_v54  ;;  %1173 = vmatmul.mubr.f32.gmra.mrb[14].mxu1 %v220_v55 }
 0x103   : > { %v1129_v57 = vpop.f32.mrb[0].mxu0  ;;  %v1153_v58 = vpop.f32.mrb[0].mxu1 }
 0x104   : > { %v1008_v59 = vmul.f32 -1.442695, %v1129_v57  ;;  %v1024_v60 = vmul.f32 -1.442695, %v1153_v58  ;;  %v303_v61 = vpop.f32.mrb[1].mxu0  ;;  %v383_v62 = vpop.f32.mrb[1].mxu1 }
 0x105   : > { %v1007_v63 = vmul.f32 -1.442695, %v303_v61  ;;  %v1023_v0 = vmul.f32 -1.442695, %v383_v62 }
 0x106   : > { %1267 = vpow2.f32 %v1008_v59 }
 0x107   : > { %1269 = vpow2.f32 %v1024_v60  ;;  %v1132_v1 = vpop.f32.mrb[2].mxu0  ;;  %v1156_v2 = vpop.f32.mrb[2].mxu1 }
 0x108   : > { %1271 = vpow2.f32 %v1007_v63  ;;  %v1010_v3 = vmul.f32 -1.442695, %v1132_v1  ;;  %v313_v4 = vpop.f32.mrb[3].mxu0  ;;  %v1026_v5 = vmul.f32 -1.442695, %v1156_v2  ;;  %v393_v6 = vpop.f32.mrb[3].mxu1 }
 0x109   : > { %1273 = vpow2.f32 %v1023_v0  ;;  %v1009_v7 = vmul.f32 -1.442695, %v313_v4  ;;  %v1025_v8 = vmul.f32 -1.442695, %v393_v6 }
 0x10a   : > { %1275 = vpow2.f32 %v1010_v3 }
 0x10b   : > { %1277 = vpow2.f32 %v1009_v7  ;;  %v1135_v9 = vpop.f32.mrb[4].mxu0  ;;  %v1159_v10 = vpop.f32.mrb[4].mxu1 }
 0x10c   : > { %1279 = vpow2.f32 %v1026_v5  ;;  %v1012_v11 = vmul.f32 -1.442695, %v1135_v9  ;;  %v323_v12 = vpop.f32.mrb[5].mxu0  ;;  %v1028_v13 = vmul.f32 -1.442695, %v1159_v10  ;;  %v403_v14 = vpop.f32.mrb[5].mxu1 }
 0x10d   : > { %1281 = vpow2.f32 %v1025_v8  ;;  %v1011_v15 = vmul.f32 -1.442695, %v323_v12  ;;  %v1027_v16 = vmul.f32 -1.442695, %v403_v14 }
 0x10e   : > { %1283 = vpow2.f32 %v1012_v11 }
 0x10f   : > { %1285 = vpow2.f32 %v1011_v15  ;;  %v1138_v17 = vpop.f32.mrb[6].mxu0  ;;  %v1162_v18 = vpop.f32.mrb[6].mxu1 }
 0x110   : > { %v1268_v19 = vpop.eup %1267  ;;  %1287 = vpow2.f32 %v1028_v13  ;;  %v1014_v20 = vmul.f32 -1.442695, %v1138_v17  ;;  %v333_v21 = vpop.f32.mrb[7].mxu0  ;;  %v1030_v61 = vmul.f32 -1.442695, %v1162_v18 }
 0x111   : > { %v413_v22 = vpop.f32.mrb[7].mxu1  ;;  %v1270_v23 = vpop.eup %1269  ;;  %v559_v24 = vadd.f32 1.0, %v1268_v19  ;;  %1289 = vpow2.f32 %v1027_v16  ;;  %v1013_v57 = vmul.f32 -1.442695, %v333_v21 }
 0x112   : > { %v1272_v25 = vpop.eup %1271  ;;  %v575_v26 = vadd.f32 1.0, %v1270_v23  ;;  %1291 = vpow2.f32 %v1014_v20  ;;  %v1029_v0 = vmul.f32 -1.442695, %v413_v22 }
 0x113   : > { %v1274_v27 = vpop.eup %1273  ;;  %1293 = vrcp.f32 %v559_v24  ;;  %v558_v28 = vadd.f32 1.0, %v1272_v25  ;;  %v1141_v29 = vpop.f32.mrb[8].mxu0 }
 0x114   : > { %v1165_v30 = vpop.f32.mrb[8].mxu1  ;;  %v1276_v31 = vpop.eup %1275  ;;  %1295 = vrcp.f32 %v575_v26  ;;  %v574_v32 = vadd.f32 1.0, %v1274_v27  ;;  %v1016_v2 = vmul.f32 -1.442695, %v1141_v29 }
 0x115   : > { %v343_v33 = vpop.f32.mrb[9].mxu0  ;;  %v1278_v34 = vpop.eup %1277  ;;  %1297 = vrcp.f32 %v558_v28  ;;  %v561_v35 = vadd.f32 1.0, %v1276_v31  ;;  %v1032_v10 = vmul.f32 -1.442695, %v1165_v30 }
 0x116   : > { %v423_v36 = vpop.f32.mrb[9].mxu1  ;;  %v1280_v37 = vpop.eup %1279  ;;  %1299 = vrcp.f32 %v574_v32  ;;  %v560_v38 = vadd.f32 1.0, %v1278_v34  ;;  %v1015_v6 = vmul.f32 -1.442695, %v343_v33 }
 0x117   : > { %v1282_v39 = vpop.eup %1281  ;;  %1301 = vrcp.f32 %v561_v35  ;;  %v577_v40 = vadd.f32 1.0, %v1280_v37  ;;  %v1144_v41 = vpop.f32.mrb[10].mxu0  ;;  %v1031_v12 = vmul.f32 -1.442695, %v423_v36 }
 0x118   : > { %v1168_v42 = vpop.f32.mrb[10].mxu1  ;;  %v1284_v43 = vpop.eup %1283  ;;  %1303 = vrcp.f32 %v560_v38  ;;  %v576_v44 = vadd.f32 1.0, %v1282_v39  ;;  %v1018_v14 = vmul.f32 -1.442695, %v1144_v41 }
 0x119   : > { %v353_v45 = vpop.f32.mrb[11].mxu0  ;;  %v1286_v46 = vpop.eup %1285  ;;  %1305 = vrcp.f32 %v577_v40  ;;  %v563_v47 = vadd.f32 1.0, %v1284_v43  ;;  %v1034_v18 = vmul.f32 -1.442695, %v1168_v42 }
 0x11a   : > { %v433_v48 = vpop.f32.mrb[11].mxu1  ;;  %v1288_v49 = vpop.eup %1287  ;;  %1307 = vrcp.f32 %v576_v44  ;;  %v562_v50 = vadd.f32 1.0, %v1286_v46  ;;  %v1017_v16 = vmul.f32 -1.442695, %v353_v45 }
 0x11b   : > { %v1290_v51 = vpop.eup %1289  ;;  %1309 = vrcp.f32 %v563_v47  ;;  %v579_v52 = vadd.f32 1.0, %v1288_v49  ;;  %v1147_v53 = vpop.f32.mrb[12].mxu0  ;;  %v1033_v20 = vmul.f32 -1.442695, %v433_v48 }
 0x11c   : > { %v1623_v54 = vpop.f32.mrb[12].mxu1  ;;  %v1292_v55 = vpop.eup %1291  ;;  %1311 = vrcp.f32 %v562_v50  ;;  %v578_v56 = vadd.f32 1.0, %v1290_v51  ;;  %v1020_v29 = vmul.f32 -1.442695, %v1147_v53 }
 0x11d   : > { %v363_v58 = vpop.f32.mrb[13].mxu0  ;;  %v1294_v59 = vpop.eup %1293  ;;  %1313 = vrcp.f32 %v579_v52  ;;  %v565_v60 = vadd.f32 1.0, %v1292_v55  ;;  %v1036_v48 = vmul.f32 -1.442695, %v1623_v54 }
 0x11e   : > { %v1625_v62 = vpop.f32.mrb[13].mxu1  ;;  %v1296_v63 = vpop.eup %1295  ;;  %1315 = vrcp.f32 %v578_v56  ;;  %693 = vperm.xlu0 %1265, %v1294_v59   ;;  %v1019_v32 = vmul.f32 -1.442695, %v363_v58 }
 0x11f   : > { %v1298_v1 = vpop.eup %1297  ;;  %1317 = vrcp.f32 %v565_v60  ;;  %773 = vperm.xlu1 %1266, %v1296_v63   ;;  %v1627_v3 = vpop.f32.mrb[14].mxu0  ;;  %v1035_v50 = vmul.f32 -1.442695, %v1625_v62 }
 0x120   : > { %v1629_v4 = vpop.f32.mrb[14].mxu1  ;;  %v1300_v5 = vpop.eup %1299  ;;  %1319 = vpow2.f32 %v1013_v57  ;;  %v1022_v52 = vmul.f32 -1.442695, %v1627_v3 }
 0x121   : > { %v1631_v7 = vpop.f32.mrb[15].mxu0  ;;  %v1633_v8 = vpop.f32.mrb[15].mxu1  ;;  %1321 = vpow2.f32 %v1030_v61  ;;  %v1038_v57 = vmul.f32 -1.442695, %v1629_v4 }
 0x122   : > { %v1302_v9 = vpop.eup %1301  ;;  %1323 = vpow2.f32 %v1029_v0  ;;  %688 = vperm.xlu0 %1265, %v1298_v1   ;;  %v1021_v55 = vmul.f32 -1.442695, %v1631_v7  ;;  %v1037_v54 = vmul.f32 -1.442695, %v1633_v8 }
 0x123   : > { %v1304_v11 = vpop.eup %1303  ;;  %1325 = vpow2.f32 %v1016_v2  ;;  %703 = vperm.xlu1 %1266, %v1302_v9  }
 0x124   : > { %v1306_v13 = vpop.eup %1305  ;;  %1327 = vpow2.f32 %v1015_v6 }
 0x125   : > { %v1308_v15 = vpop.eup %1307  ;;  %1329 = vpow2.f32 %v1032_v10 }
 0x126   : > { %v1310_v17 = vpop.eup %1309  ;;  %1331 = vpow2.f32 %v1031_v12  ;;  %768 = vperm.xlu0 %1265, %v1300_v5  }
 0x127   : > { %v1312_v19 = vpop.eup %1311  ;;  %783 = vperm.xlu1 %1266, %v1306_v13   ;;  %1333 = vpow2.f32 %v1018_v14 }
 0x128   : > { %v1314_v21 = vpop.eup %1313  ;;  %1335 = vpow2.f32 %v1017_v16 }
 0x129   : > { %v1316_v22 = vpop.eup %1315  ;;  %1337 = vpow2.f32 %v1034_v18 }
 0x12a   : > { %v1318_v23 = vpop.eup %1317  ;;  %778 = vperm.xlu0 %1265, %v1308_v15   ;;  %1339 = vpow2.f32 %v1033_v20 }
 0x12b   : > { %v1320_v24 = vpop.eup %1319  ;;  %698 = vperm.xlu1 %1266, %v1304_v11  }
 0x12c   : > { %v1322_v25 = vpop.eup %1321  ;;  %v564_v26 = vadd.f32 1.0, %v1320_v24 }
 0x12d   : > { %v1324_v27 = vpop.eup %1323  ;;  %v581_v28 = vadd.f32 1.0, %v1322_v25  ;;  %v655_v25 = vld [vmem:[%s1647_s30 + $0x8] sm:$0xff] }
 0x12e   : > { %v1326_v30 = vpop.eup %1325  ;;  %1341 = vrcp.f32 %v564_v26  ;;  %v580_v31 = vadd.f32 1.0, %v1324_v27  ;;  %708 = vperm.xlu0 %1265, %v1312_v19   ;;  %v671_v26 = vld [vmem:[%s1647_s30 + $0x88] sm:$0xff] }
 0x12f   : > { %v1328_v33 = vpop.eup %1327  ;;  %1343 = vrcp.f32 %v581_v28  ;;  %v567_v34 = vadd.f32 1.0, %v1326_v30  ;;  %713 = vperm.xlu1 %1266, %v1310_v17  }
 0x130   : > { %v1330_v35 = vpop.eup %1329  ;;  %1345 = vrcp.f32 %v580_v31  ;;  %v566_v36 = vadd.f32 1.0, %v1328_v33  ;;  %v654_v31 = vld [vmem:[%s1647_s30] sm:$0xff] }
 0x131   : > { %v1332_v37 = vpop.eup %1331  ;;  %v583_v38 = vadd.f32 1.0, %v1330_v35  ;;  %1347 = vpow2.f32 %v1020_v29 }
 0x132   : > { %v1334_v39 = vpop.eup %1333  ;;  %v582_v40 = vadd.f32 1.0, %v1332_v37  ;;  %1349 = vpow2.f32 %v1019_v32  ;;  %788 = vperm.xlu0 %1265, %v1316_v22   ;;  %v657_v32 = vld [vmem:[%s1647_s30 + $0x18] sm:$0xff]  ;;  %v670_v37 = vld [vmem:[%s1647_s30 + $0x80] sm:$0xff] }
 0x133   : > { %v1336_v41 = vpop.eup %1335  ;;  %1351 = vrcp.f32 %v567_v34  ;;  %v569_v42 = vadd.f32 1.0, %v1334_v39  ;;  %793 = vperm.xlu1 %1266, %v1314_v21  }
 0x134   : > { %v1338_v43 = vpop.eup %1337  ;;  %1353 = vrcp.f32 %v566_v36  ;;  %v568_v44 = vadd.f32 1.0, %v1336_v41 }
 0x135   : > { %v1340_v45 = vpop.eup %1339  ;;  %1355 = vrcp.f32 %v583_v38  ;;  %v585_v46 = vadd.f32 1.0, %v1338_v43  ;;  %v673_v38 = vld [vmem:[%s1647_s30 + $0x98] sm:$0xff]  ;;  %v672_v43 = vld [vmem:[%s1647_s30 + $0x90] sm:$0xff] }
 0x136   : > { %1357 = vrcp.f32 %v582_v40  ;;  %v584_v47 = vadd.f32 1.0, %v1340_v45 }
 0x137   : > { %1359 = vrcp.f32 %v569_v42  ;;  %723 = vperm.xlu1 %1266, %v1318_v23  }
 0x138   : > { %v1342_v49 = vpop.eup %1341  ;;  %1361 = vrcp.f32 %v568_v44  ;;  %v656_v44 = vld [vmem:[%s1647_s30 + $0x10] sm:$0xff] }
 0x139   : > { %v1344_v51 = vpop.eup %1343  ;;  %1363 = vrcp.f32 %v585_v46  ;;  %718 = vperm.xlu0 %1265, %v1342_v49   ;;  %v658_v49 = vld [vmem:[%s1647_s30 + $0x20] sm:$0xff] }
 0x13a   : > { %v1346_v53 = vpop.eup %1345  ;;  %1365 = vrcp.f32 %v584_v47 }
 0x13b   : > { %v1348_v56 = vpop.eup %1347  ;;  %1367 = vpow2.f32 %v1036_v48  ;;  %803 = vperm.xlu1 %1266, %v1344_v51  }
 0x13c   : > { %v1350_v58 = vpop.eup %1349  ;;  %1369 = vpow2.f32 %v1035_v50  ;;  %v571_v62 = vadd.f32 1.0, %v1348_v56  ;;  %v659_v50 = vld [vmem:[%s1647_s30 + $0x28] sm:$0xff]  ;;  %v674_v56 = vld [vmem:[%s1647_s30 + $0xa0] sm:$0xff] }
 0x13d   : > { %v1352_v59 = vpop.eup %1351  ;;  %1371 = vpow2.f32 %v1022_v52  ;;  %798 = vperm.xlu0 %1265, %v1346_v53   ;;  %v570_v0 = vadd.f32 1.0, %v1350_v58 }
 0x13e   : > { %v1354_v60 = vpop.eup %1353  ;;  %1373 = vpow2.f32 %v1021_v55 }
 0x13f   : > { %v1356_v61 = vpop.eup %1355  ;;  %1375 = vpow2.f32 %v1038_v57  ;;  %733 = vperm.xlu1 %1266, %v1352_v59   ;;  %v675_v57 = vld [vmem:[%s1647_s30 + $0xa8] sm:$0xff] }
 0x140   : > { %v1358_v63 = vpop.eup %1357  ;;  %1377 = vpow2.f32 %v1037_v54 }
 0x141   : > { %v1360_v1 = vpop.eup %1359  ;;  %728 = vperm.xlu0 %1265, %v1354_v60   ;;  %1379 = vrcp.f32 %v571_v62  ;;  %v660_v62 = vld [vmem:[%s1647_s30 + $0x30] sm:$0xff] }
 0x142   : > { %v1362_v2 = vpop.eup %1361  ;;  %1381 = vrcp.f32 %v570_v0 }
 0x143   : > { %v1364_v3 = vpop.eup %1363  ;;  %813 = vperm.xlu1 %1266, %v1356_v61   ;;  %v661_v61 = vld [vmem:[%s1647_s30 + $0x38] sm:$0xff] }
 0x144   : > { %v1366_v4 = vpop.eup %1365 }
 0x145   : > { %v1368_v5 = vpop.eup %1367  ;;  %808 = vperm.xlu0 %1265, %v1358_v63  }
 0x146   : > { %v1370_v6 = vpop.eup %1369  ;;  %v587_v7 = vadd.f32 1.0, %v1368_v5 }
 0x147   : > { %v1372_v8 = vpop.eup %1371  ;;  %v586_v9 = vadd.f32 1.0, %v1370_v6  ;;  %743 = vperm.xlu1 %1266, %v1360_v1  }
 0x148   : > { %v1374_v10 = vpop.eup %1373  ;;  %1383 = vrcp.f32 %v587_v7  ;;  %v573_v11 = vadd.f32 1.0, %v1372_v8 }
 0x149   : > { %v1376_v12 = vpop.eup %1375  ;;  %1385 = vrcp.f32 %v586_v9  ;;  %v572_v13 = vadd.f32 1.0, %v1374_v10  ;;  %738 = vperm.xlu0 %1265, %v1362_v2   ;;  %v663_v9 = vld [vmem:[%s1647_s30 + $0x48] sm:$0xff]  ;;  %v662_v10 = vld [vmem:[%s1647_s30 + $0x40] sm:$0xff] }
 0x14a   : > { %v1378_v14 = vpop.eup %1377  ;;  %1387 = vrcp.f32 %v573_v11  ;;  %v589_v15 = vadd.f32 1.0, %v1376_v12 }
 0x14b   : > { %1389 = vrcp.f32 %v572_v13  ;;  %v588_v16 = vadd.f32 1.0, %v1378_v14  ;;  %823 = vperm.xlu1 %1266, %v1364_v3   ;;  %v1380_v17 = vpop.eup %1379  ;;  %v677_v3 = vld [vmem:[%s1647_s30 + $0xb8] sm:$0xff] }
 0x14c   : > { %v1382_v18 = vpop.eup %1381  ;;  %1391 = vrcp.f32 %v589_v15  ;;  %v679_v15 = vld [vmem:[%s1647_s30 + $0xc8] sm:$0xff] }
 0x14d   : > { %818 = vperm.xlu0 %1265, %v1366_v4   ;;  %1393 = vrcp.f32 %v588_v16  ;;  %v676_v4 = vld [vmem:[%s1647_s30 + $0xb0] sm:$0xff]  ;;  %v678_v16 = vld [vmem:[%s1647_s30 + $0xc0] sm:$0xff] }
 0x14f   : > { %753 = vperm.xlu1 %1266, %v1380_v17  }
 0x151   : > { %748 = vperm.xlu0 %1265, %v1382_v18  }
 0x152   : > { %v1384_v19 = vpop.eup %1383 }
 0x153   : > { %v1386_v20 = vpop.eup %1385  ;;  %833 = vperm.xlu1 %1266, %v1384_v19  }
 0x154   : > { %v1388_v21 = vpop.eup %1387 }
 0x155   : > { %828 = vperm.xlu0 %1265, %v1386_v20   ;;  %v1390_v22 = vpop.eup %1389 }
 0x156   : > { %v1392_v23 = vpop.eup %1391 }
 0x157   : > { %763 = vperm.xlu1 %1266, %v1388_v21   ;;  %v1394_v24 = vpop.eup %1393  ;;  %v665_v21 = vld [vmem:[%s1647_s30 + $0x58] sm:$0xff] }
 0x159   : > { %758 = vperm.xlu0 %1265, %v1390_v22   ;;  %v664_v22 = vld [vmem:[%s1647_s30 + $0x50] sm:$0xff] }
 0x15b   : > { %843 = vperm.xlu1 %1266, %v1392_v23  }
 0x15d   : > { %838 = vperm.xlu0 %1265, %v1394_v24  }
 0x19d   : > { %v694_v27 = vpop.permute.xlu0 %693 }
 0x19e   : > { %v774_v28 = vpop.permute.xlu1 %773  ;;  %v847_v29 = vmul.f32 %v694_v27, %v655_v25  ;;  %v681_v27 = vld [vmem:[%s1647_s30 + $0xd8] sm:$0xff] }
 0x19f   : > { %v863_v30 = vmul.f32 %v774_v28, %v671_v26  ;;  %v680_v28 = vld [vmem:[%s1647_s30 + $0xd0] sm:$0xff] }
 0x1a0   : > { %879 = vst [vmem:[%s1654_s9 + $0x8] sm:$0xff] %v847_v29 }
 0x1a1   : > { %895 = vst [vmem:[%s1654_s9 + $0x88] sm:$0xff] %v863_v30  ;;  %v689_v33 = vpop.permute.xlu0 %688 }
 0x1a2   : > { %v846_v34 = vmul.f32 %v689_v33, %v654_v31  ;;  %v704_v35 = vpop.permute.xlu1 %703  ;;  %v667_v33 = vld [vmem:[%s1647_s30 + $0x68] sm:$0xff] }
 0x1a3   : > { %v849_v36 = vmul.f32 %v704_v35, %v657_v32 }
 0x1a4   : > { %878 = vst [vmem:[%s1654_s9] sm:$0xff] %v846_v34  ;;  %v666_v34 = vld [vmem:[%s1647_s30 + $0x60] sm:$0xff] }
 0x1a5   : > { %881 = vst [vmem:[%s1654_s9 + $0x18] sm:$0xff] %v849_v36  ;;  %v769_v39 = vpop.permute.xlu0 %768 }
 0x1a6   : > { %v862_v40 = vmul.f32 %v769_v39, %v670_v37  ;;  %v784_v41 = vpop.permute.xlu1 %783  ;;  %v683_v39 = vld [vmem:[%s1647_s30 + $0xe8] sm:$0xff] }
 0x1a7   : > { %v865_v42 = vmul.f32 %v784_v41, %v673_v38 }
 0x1a8   : > { %894 = vst [vmem:[%s1654_s9 + $0x80] sm:$0xff] %v862_v40  ;;  %v682_v40 = vld [vmem:[%s1647_s30 + $0xe0] sm:$0xff] }
 0x1a9   : > { %897 = vst [vmem:[%s1654_s9 + $0x98] sm:$0xff] %v865_v42  ;;  %v779_v45 = vpop.permute.xlu0 %778 }
 0x1aa   : > { %v864_v46 = vmul.f32 %v779_v45, %v672_v43  ;;  %v699_v47 = vpop.permute.xlu1 %698  ;;  %v669_v45 = vld [vmem:[%s1647_s30 + $0x78] sm:$0xff] }
 0x1ab   : > { %v848_v48 = vmul.f32 %v699_v47, %v656_v44 }
 0x1ac   : > { %896 = vst [vmem:[%s1654_s9 + $0x90] sm:$0xff] %v864_v46  ;;  %v668_v46 = vld [vmem:[%s1647_s30 + $0x70] sm:$0xff] }
 0x1ad   : > { %880 = vst [vmem:[%s1654_s9 + $0x10] sm:$0xff] %v848_v48  ;;  %v709_v51 = vpop.permute.xlu0 %708 }
 0x1ae   : > { %v714_v52 = vpop.permute.xlu1 %713  ;;  %v850_v53 = vmul.f32 %v709_v51, %v658_v49  ;;  %v685_v51 = vld [vmem:[%s1647_s30 + $0xf8] sm:$0xff] }
 0x1af   : > { %v851_v55 = vmul.f32 %v714_v52, %v659_v50  ;;  %v684_v52 = vld [vmem:[%s1647_s30 + $0xf0] sm:$0xff] }
 0x1b0   : > { %882 = vst [vmem:[%s1654_s9 + $0x20] sm:$0xff] %v850_v53 }
 0x1b1   : > { %883 = vst [vmem:[%s1654_s9 + $0x28] sm:$0xff] %v851_v55  ;;  %v789_v58 = vpop.permute.xlu0 %788 }
 0x1b2   : > { %v794_v54 = vpop.permute.xlu1 %793  ;;  %v866_v59 = vmul.f32 %v789_v58, %v674_v56 }
 0x1b3   : > { %v867_v60 = vmul.f32 %v794_v54, %v675_v57 }
 0x1b4   : > { %898 = vst [vmem:[%s1654_s9 + $0xa0] sm:$0xff] %v866_v59 }
 0x1b5   : > { %899 = vst [vmem:[%s1654_s9 + $0xa8] sm:$0xff] %v867_v60 }
 0x1b6   : > { %v724_v63 = vpop.permute.xlu1 %723 }
 0x1b7   : > { %v853_v0 = vmul.f32 %v724_v63, %v661_v61 }
 0x1b8   : > { %v719_v1 = vpop.permute.xlu0 %718 }
 0x1b9   : > { %v852_v2 = vmul.f32 %v719_v1, %v660_v62  ;;  %885 = vst [vmem:[%s1654_s9 + $0x38] sm:$0xff] %v853_v0 }
 0x1ba   : > { %v804_v5 = vpop.permute.xlu1 %803 }
 0x1bb   : > { %884 = vst [vmem:[%s1654_s9 + $0x30] sm:$0xff] %v852_v2  ;;  %v869_v6 = vmul.f32 %v804_v5, %v677_v3 }
 0x1bc   : > { %v799_v7 = vpop.permute.xlu0 %798 }
 0x1bd   : > { %v868_v8 = vmul.f32 %v799_v7, %v676_v4  ;;  %901 = vst [vmem:[%s1654_s9 + $0xb8] sm:$0xff] %v869_v6 }
 0x1be   : > { %v734_v11 = vpop.permute.xlu1 %733 }
 0x1bf   : > { %900 = vst [vmem:[%s1654_s9 + $0xb0] sm:$0xff] %v868_v8  ;;  %v855_v12 = vmul.f32 %v734_v11, %v663_v9 }
 0x1c0   : > { %v729_v13 = vpop.permute.xlu0 %728 }
 0x1c1   : > { %v854_v14 = vmul.f32 %v729_v13, %v662_v10  ;;  %887 = vst [vmem:[%s1654_s9 + $0x48] sm:$0xff] %v855_v12 }
 0x1c2   : > { %v814_v17 = vpop.permute.xlu1 %813 }
 0x1c3   : > { %886 = vst [vmem:[%s1654_s9 + $0x40] sm:$0xff] %v854_v14  ;;  %v871_v18 = vmul.f32 %v814_v17, %v679_v15 }
 0x1c4   : > { %v809_v19 = vpop.permute.xlu0 %808 }
 0x1c5   : > { %v870_v20 = vmul.f32 %v809_v19, %v678_v16  ;;  %903 = vst [vmem:[%s1654_s9 + $0xc8] sm:$0xff] %v871_v18 }
 0x1c6   : > { %v744_v23 = vpop.permute.xlu1 %743 }
 0x1c7   : > { %902 = vst [vmem:[%s1654_s9 + $0xc0] sm:$0xff] %v870_v20  ;;  %v857_v24 = vmul.f32 %v744_v23, %v665_v21 }
 0x1c8   : > { %v739_v25 = vpop.permute.xlu0 %738 }
 0x1c9   : > { %v856_v26 = vmul.f32 %v739_v25, %v664_v22  ;;  %889 = vst [vmem:[%s1654_s9 + $0x58] sm:$0xff] %v857_v24 }
 0x1ca   : > { %v824_v29 = vpop.permute.xlu1 %823 }
 0x1cb   : > { %888 = vst [vmem:[%s1654_s9 + $0x50] sm:$0xff] %v856_v26  ;;  %v873_v30 = vmul.f32 %v824_v29, %v681_v27 }
 0x1cc   : > { %v819_v31 = vpop.permute.xlu0 %818 }
 0x1cd   : > { %v872_v32 = vmul.f32 %v819_v31, %v680_v28  ;;  %905 = vst [vmem:[%s1654_s9 + $0xd8] sm:$0xff] %v873_v30 }
 0x1ce   : > { %v754_v35 = vpop.permute.xlu1 %753 }
 0x1cf   : > { %904 = vst [vmem:[%s1654_s9 + $0xd0] sm:$0xff] %v872_v32  ;;  %v859_v36 = vmul.f32 %v754_v35, %v667_v33 }
 0x1d0   : > { %v749_v37 = vpop.permute.xlu0 %748 }
 0x1d1   : > { %v858_v38 = vmul.f32 %v749_v37, %v666_v34  ;;  %891 = vst [vmem:[%s1654_s9 + $0x68] sm:$0xff] %v859_v36 }
 0x1d2   : > { %v834_v41 = vpop.permute.xlu1 %833 }
 0x1d3   : > { %890 = vst [vmem:[%s1654_s9 + $0x60] sm:$0xff] %v858_v38  ;;  %v875_v42 = vmul.f32 %v834_v41, %v683_v39 }
 0x1d4   : > { %v829_v43 = vpop.permute.xlu0 %828 }
 0x1d5   : > { %v874_v44 = vmul.f32 %v829_v43, %v682_v40  ;;  %907 = vst [vmem:[%s1654_s9 + $0xe8] sm:$0xff] %v875_v42 }
 0x1d6   : > { %v764_v47 = vpop.permute.xlu1 %763 }
 0x1d7   : > { %906 = vst [vmem:[%s1654_s9 + $0xe0] sm:$0xff] %v874_v44  ;;  %v861_v48 = vmul.f32 %v764_v47, %v669_v45 }
 0x1d8   : > { %v759_v49 = vpop.permute.xlu0 %758 }
 0x1d9   : > { %v860_v50 = vmul.f32 %v759_v49, %v668_v46  ;;  %893 = vst [vmem:[%s1654_s9 + $0x78] sm:$0xff] %v861_v48 }
 0x1da   : > { %v844_v53 = vpop.permute.xlu1 %843 }
 0x1db   : > { %892 = vst [vmem:[%s1654_s9 + $0x70] sm:$0xff] %v860_v50  ;;  %v877_v55 = vmul.f32 %v844_v53, %v685_v51 }
 0x1dc   : > { %v839_v56 = vpop.permute.xlu0 %838 }
 0x1dd   : > { %v876_v57 = vmul.f32 %v839_v56, %v684_v52  ;;  %909 = vst [vmem:[%s1654_s9 + $0xf8] sm:$0xff] %v877_v55 }
 0x1df   : > { %908 = vst [vmem:[%s1654_s9 + $0xf0] sm:$0xff] %v876_v57 }
 0x1e0   : > { %1408 = shalt.err (!%p1405_p3)
}
 0x1e1   : > { %s1409_s25 = scalar_lea.hbm %s1720_s8, 4096  ;;  %s1413_s24 = scalar_lea.hbm %s1772_s3, 8192 }
 0x1e2   : > { %p1410_p4 = scmp.ne.s32.totalorder %s1720_s8, %s1409_s25  ;;  %p1414_p9 = scmp.lt.u32.totalorder %s1720_s8, %s1772_s3 }
 0x1e3   : > { %p1415_p10 = scmp.lt.u32.totalorder %s1413_s24, %s1409_s25  ;;  %p1417_p12 = scmp.lt.u32.totalorder %s1409_s25, %s1720_s8 }
 0x1e4   : > { %p1411_p7 = pnand %p1410_p4, %p1521_p5 }
 0x1e5   : > { %p1416_p11 = por %p1415_p10, %p1414_p9 }
 0x1e6   : > { %p1412_p8 = pneg %p1411_p7 }
 0x1e7   : > { %p1418_p13 = por %p1417_p12, %p1416_p11 }
 0x1e9   : > { %p1419_p0 = pnand %p1418_p13, %p1412_p8 }
 0x1eb   : > { %1422 = shalt.err (!%p1419_p0)
}
 0x1ec   : > { %s1461_s30 = smov 128   ;;  %s1462_s4 = smov 8  }
 0x1ed   : > { %1223 = dma.vmem_to_hbm [thread:$0]  (%p1521_p5), %s1722_s5, 4096, %s1720_s8, %s1728_s16, %s1461_s30, %s1461_s30, %s1462_s4  }
 0x1ee PF: > { %p1229_p1 = scmp.ge.s32.totalorder %s1457_s15, 2  ;;  %s939_s9 = sand.u32 1, %s1445_s12  }
 0x1ef   : > { %s940_s10 = scalar_lea.sflag [#allocation3], %s939_s9 }
 0x1f0   : > { %p1226_p2 = pnand %p1229_p1, %p1525_p6 }
 0x1f2   : > { %1440 = dma.done.wait (!%p1226_p2), %s940_s10, 4096  }
 0x1f3   : > { %1442 = vsyncadd (!%p1226_p2), %s940_s10, 4294963200  ;;  %p13_p3 = scmp.ge.s32.totalorder %s1508_s18, 4   ;;  %s1775_s12 = smov %s1449_s13 }
 0x1f4   : > { %s1776_s13 = smov %s1453_s14  ;;  %s1777_s14 = smov %s1519_s21 }
 0x1f5   : > { %s1778_s15 = smov %s1508_s18  ;;  %15 = sbr.rel (!%p13_p3) target bundleno = 3 (0x3), region = 70 }
 0x1fc   :  { %945 = vsyncpa [#allocation3], 1 }
 0x1fd   :  { %947 = vsyncpa [#allocation3 + $0x1], 1 }

</bundles_post_ra>
